<compile_context>
chip_gen: v7x
topology: tpu7x:2x2x1
jax: 0.10.0
libtpu: 0.0.40
codegen_flags: <defaults>
</compile_context>

<pallas_src>
import functools

import jax
import jax.numpy as jnp
from jax.experimental import pallas as pl
from jax.experimental.pallas import tpu as pltpu


def _round_up(x, m):
    return (x + m - 1) // m * m


def _hidden_alignment():
    # 2x256x256 MXU on v6e/v7x -> round hidden width to 256; 128 otherwise.
    try:
        kind = jax.devices()[0].device_kind.lower()
    except Exception:
        return 128
    if any(g in kind for g in ("v2", "v3", "v4", "v5")):
        return 128
    return 256


def _bf16_act_ok():
    # bf16 VPU/EUP only on v6e/v7x.
    try:
        kind = jax.devices()[0].device_kind.lower()
    except Exception:
        return False
    return not any(g in kind for g in ("v2", "v3", "v4", "v5"))


# --------------------------------------------------------------------------
# Fused Pallas kernel: all MaskedLinear layers + tanh/sigmoid + free_top FMA
# --------------------------------------------------------------------------
def _made_fused_kernel(*refs, n_mid, act_dtype):
    if n_mid > 0:
        (x_ref, w0_ref, b0_ref, wm_ref, bm_ref,
         wl_ref, bl_ref, f0_ref, f1_ref, o_ref) = refs
    else:
        (x_ref, w0_ref, b0_ref,
         wl_ref, bl_ref, f0_ref, f1_ref, o_ref) = refs
        wm_ref = bm_ref = None

    h = x_ref[...]                                          # (BM, DP) f32

    # layer 0: D -> W (mask pre-folded, pre-transposed), f32 accumulation
    y = jnp.dot(h.astype(w0_ref.dtype), w0_ref[...],
                preferred_element_type=jnp.float32) + b0_ref[...]
    h = jnp.tanh(y.astype(act_dtype))                       # EUP

    # hidden layers: W -> W (static unrolled; weights resident in VMEM)
    for l in range(n_mid):
        y = jnp.dot(h.astype(wm_ref.dtype), wm_ref[l],
                    preferred_element_type=jnp.float32) + bm_ref[l]
        h = jnp.tanh(y.astype(act_dtype))

    # last layer: W -> D, sigmoid
    y = jnp.dot(h.astype(wl_ref.dtype), wl_ref[...],
                preferred_element_type=jnp.float32) + bl_ref[...]
    xhat = jax.nn.sigmoid(y.astype(act_dtype)).astype(jnp.float32)

    # xhat * free_top0 + free_top1   (padded lanes of f0/f1 are zero)
    o_ref[...] = (xhat * f0_ref[...] + f1_ref[...]).astype(o_ref.dtype)


# --------------------------------------------------------------------------
# Wrapper: pad batch/lanes, one pallas_call, slice result
# --------------------------------------------------------------------------
def _choose_bm(B):
    if B <= 512:
        return _round_up(B, 8)
    # minimize padded rows, prefer larger tiles (weights are resident anyway)
    return min((512, 384, 256, 128), key=lambda c: (_round_up(B, c) - B, -c))


def _made_forward(x, params, single_buffer_resident=True):
    w0, b0 = params["w0"], params["b0"]
    wm, bm = params["wm"], params["bm"]
    wl, bl = params["wl"], params["bl"]
    f0, f1 = params["free_top0"], params["free_top1"]
    D = params["D"]
    W = params["W"]
    act_dtype = params["act_dtype"]

    DP, HP = w0.shape
    n_mid = 0 if wm is None else wm.shape[0]

    B = x.shape[0]
    BM = _choose_bm(B)
    B_pad = _round_up(B, BM)
    grid = (B_pad // BM,)

    x_pad = jnp.pad(x.astype(jnp.float32), ((0, B_pad - B), (0, DP - D)))

    # Resident operands never change across batch tiles -> single-buffer them.
    res_kw = dict(pipeline_mode=pl.Buffered(1)) if single_buffer_resident else {}

    in_specs = [
        pl.BlockSpec((BM, DP), lambda i: (i, 0)),                 # x: tiled
        pl.BlockSpec((DP, HP), lambda i: (0, 0), **res_kw),       # w0 resident
        pl.BlockSpec((1, HP), lambda i: (0, 0), **res_kw),        # b0
    ]
    args = [x_pad, w0, b0]
    if n_mid > 0:
        in_specs += [
            pl.BlockSpec((n_mid, HP, HP), lambda i: (0, 0, 0), **res_kw),
            pl.BlockSpec((n_mid, 1, HP), lambda i: (0, 0, 0), **res_kw),
        ]
        args += [wm, bm]
    in_specs += [
        pl.BlockSpec((HP, DP), lambda i: (0, 0), **res_kw),       # w_last
        pl.BlockSpec((1, DP), lambda i: (0, 0), **res_kw),        # b_last
        pl.BlockSpec((1, DP), lambda i: (0, 0), **res_kw),        # free_top0
        pl.BlockSpec((1, DP), lambda i: (0, 0), **res_kw),        # free_top1
    ]
    args += [wl, bl, f0, f1]

    # Explicit VMEM budget: resident slabs + double-buffered I/O tiles + slack.
    wbytes = w0.dtype.itemsize
    resident_bytes = ((DP * HP + n_mid * HP * HP + HP * DP) * wbytes
                      + (HP + n_mid * HP + 3 * DP) * 4)
    if not single_buffer_resident:
        resident_bytes *= 2
    io_bytes = 2 * (BM * DP * 4) * 2            # 2x buffered x tile + out tile
    scratch_bytes = 6 * BM * HP * 4             # per-layer f32 temporaries (est.)
    vmem_limit = int(min(64 * 1024 * 1024,
                         max(resident_bytes + io_bytes + scratch_bytes + (4 << 20),
                             16 * 1024 * 1024)))
    # TODO(synk): layer-streamed weight pipeline fallback when the resident slab
    # exceeds ~40-48 MiB (v7x has 64 MiB VMEM/TC); demo slabs are << 1 MiB.

    # Advisory cost estimate (logical, unpadded dims).
    L = n_mid + 2
    flops = 2 * B_pad * (D * W + n_mid * W * W + W * D) + 2 * B_pad * D
    transcendentals = B_pad * ((L - 1) * W + D)
    bytes_accessed = resident_bytes + B_pad * DP * 4 * 2
    ce = pl.CostEstimate(flops=int(flops),
                         transcendentals=int(transcendentals),
                         bytes_accessed=int(bytes_accessed))

    out = pl.pallas_call(
        functools.partial(_made_fused_kernel, n_mid=n_mid, act_dtype=act_dtype),
        out_shape=jax.ShapeDtypeStruct((B_pad, DP), jnp.float32),
        grid=grid,
        in_specs=in_specs,
        out_specs=pl.BlockSpec((BM, DP), lambda i: (i, 0)),
        compiler_params=pltpu.CompilerParams(
            dimension_semantics=("parallel",),
            vmem_limit_bytes=vmem_limit),
        cost_estimate=ce,
    )(*args)

    return out[:B, :D]


def made_forward(x, params):
    # TODO(synk): for autoregressive sampling (forward called D times with the
    # same weights) use the cross-pallas_call DMA-future pattern to prefetch
    # weights once instead of re-streaming the slab every call.
    try:
        out = _made_forward(x, params, single_buffer_resident=True)
        return jax.block_until_ready(out)
    except Exception:
        # Fallback if this jax build rejects pl.Buffered(1) on resident blocks.
        out = _made_forward(x, params, single_buffer_resident=False)
        return jax.block_until_ready(out)


# --------------------------------------------------------------------------
# Parameter construction (mirrors MaskedLinear.__init__ / MADE.__init__)
# --------------------------------------------------------------------------
def build_layer_mask(base_mask, in_ch, out_ch, D, selfconnection):
    m = jnp.tril(base_mask)
    if selfconnection:
        m = m - jnp.eye(D, dtype=base_mask.dtype)
    m = jnp.concatenate([m] * in_ch, axis=1)      # (D, in_ch*D)
    m = jnp.concatenate([m] * out_ch, axis=0)     # (out_ch*D, in_ch*D)
    return m


def init_made_params(key, D, net_depth, net_width, base_mask,
                     weight_dtype=jnp.bfloat16):
    assert net_depth >= 1, "net_depth >= 1 required"
    hs = [1] + [net_width] * net_depth + [1]
    L = len(hs) - 1
    W = net_width * D
    DP = _round_up(D, 128)                      # lane-dense input/output width
    HP = _round_up(W, _hidden_alignment())      # hidden width (256 on v6e/v7x)
    n_mid = L - 2

    w0 = jnp.zeros((DP, HP), jnp.float32)
    b0 = jnp.zeros((1, HP), jnp.float32)
    wm = jnp.zeros((n_mid, HP, HP), jnp.float32) if n_mid > 0 else None
    bm = jnp.zeros((n_mid, 1, HP), jnp.float32) if n_mid > 0 else None
    wl = jnp.zeros((HP, DP), jnp.float32)
    bl = jnp.zeros((1, DP), jnp.float32)
    ref_layers = []

    for l in range(L):
        in_ch, out_ch = hs[l], hs[l + 1]
        in_f, out_f = in_ch * D, out_ch * D
        selfconn = 0 if l == 0 else 1
        mask = build_layer_mask(base_mask, in_ch, out_ch, D, selfconn)

        key, kw, kb = jax.random.split(key, 3)
        bound = 1.0 / jnp.sqrt(jnp.float32(in_f))
        weight = jax.random.uniform(kw, (out_f, in_f), jnp.float32, -bound, bound)
        bias = jax.random.uniform(kb, (out_f,), jnp.float32, -bound, bound)

        # MaskedLinear.__init__: weight *= mask; weight *= sqrt(numel/sum)
        weight = weight * mask
        weight = weight * jnp.sqrt(mask.size / jnp.sum(mask))

        # Fold forward-time (mask * weight) once, pre-transpose to (in_f, out_f).
        w_fwd = (mask * weight).T

        if l == 0:
            w0 = w0.at[:in_f, :out_f].set(w_fwd)
            b0 = b0.at[0, :out_f].set(bias)
        elif l == L - 1:
            wl = wl.at[:in_f, :out_f].set(w_fwd)
            bl = bl.at[0, :out_f].set(bias)
        else:
            wm = wm.at[l - 1, :in_f, :out_f].set(w_fwd)
            bm = bm.at[l - 1, 0, :out_f].set(bias)

        ref_layers.append({"weight": weight, "bias": bias, "mask": mask})

    # free_top buffers, zero-padded so padded output lanes end up exactly 0.
    free_top0 = jnp.zeros((1, DP), jnp.float32).at[0, :D].set(1.0).at[0, 0].set(0.0)
    free_top1 = jnp.zeros((1, DP), jnp.float32).at[0, 0].set(0.5)

    is_bf16 = jnp.dtype(weight_dtype) == jnp.dtype(jnp.bfloat16)
    act_dtype = jnp.bfloat16 if (is_bf16 and _bf16_act_ok()) else jnp.float32

    params = {
        "w0": w0.astype(weight_dtype),
        "b0": b0,
        "wm": None if wm is None else wm.astype(weight_dtype),
        "bm": bm,
        "wl": wl.astype(weight_dtype),
        "bl": bl,
        "free_top0": free_top0,
        "free_top1": free_top1,
        "D": D,
        "W": W,
        "act_dtype": act_dtype,
    }
    return params, ref_layers


# --------------------------------------------------------------------------
# Pure-JAX reference (torch semantics) for correctness check
# --------------------------------------------------------------------------
def made_forward_ref(x, layers, D):
    h = x
    n = len(layers)
    for l, p in enumerate(layers):
        h = h @ (p["mask"] * p["weight"]).T + p["bias"]
        if l < n - 1:
            h = jnp.tanh(h)
        else:
            h = jax.nn.sigmoid(h)
    free_top0 = jnp.ones((D,), jnp.float32).at[0].set(0.0)
    free_top1 = jnp.zeros((D,), jnp.float32).at[0].set(0.5)
    return h * free_top0 + free_top1


# TODO(synk): MADE.sample (partial-network fast sampling) is not part of
# forward() and is not implemented as a kernel.

if __name__ == "__main__":
    D = 8
    net_depth = 2
    net_width = 4
    batch = 2

    key = jax.random.PRNGKey(0)
    key, kmask, kx = jax.random.split(key, 3)

    # Adjacency-style binary DxD mask passed to MADE; forward only uses tril.
    base_mask = (jax.random.uniform(kmask, (D, D)) < 0.8).astype(jnp.float32)
    base_mask = base_mask.at[jnp.arange(D), jnp.arange(D)].set(1.0)

    x = jax.random.uniform(kx, (batch, D), jnp.float32)

    # --- f32 weight path: tight-tolerance torch-semantics check -------------
    params_f32, ref_layers = init_made_params(key, D, net_depth, net_width,
                                              base_mask,
                                              weight_dtype=jnp.float32)
    out_f32 = made_forward(x, params_f32)
    ref = made_forward_ref(x, ref_layers, D)
    assert out_f32.shape == (batch, D)
    assert jnp.allclose(out_f32, ref, atol=1e-4, rtol=1e-4), (
        f"f32 max abs err {jnp.max(jnp.abs(out_f32 - ref))}")

    # --- bf16 weight path (perf path): bf16 weights/activations, f32 accum --
    # Tolerance is looser because inputs to each matmul are bf16-rounded.
    params_bf16, _ = init_made_params(key, D, net_depth, net_width, base_mask,
                                      weight_dtype=jnp.bfloat16)
    out_bf16 = made_forward(x, params_bf16)
    assert out_bf16.shape == (batch, D)
    assert jnp.allclose(out_bf16, ref, atol=3e-2, rtol=3e-2), (
        f"bf16 max abs err {jnp.max(jnp.abs(out_bf16 - ref))}")

    print("KERNEL_OK")
</pallas_src>

<mosaic_0001>
module attributes {stable_mosaic.version = 11 : i64} {
  func.func @_made_fused_kernel(%arg0: i32, %arg1: memref<8x128xf32, #tpu.memory_space<vmem>>, %arg2: memref<128x256xf32, #tpu.memory_space<vmem>>, %arg3: memref<1x256xf32, #tpu.memory_space<vmem>>, %arg4: memref<1x256x256xf32, #tpu.memory_space<vmem>>, %arg5: memref<1x1x256xf32, #tpu.memory_space<vmem>>, %arg6: memref<256x128xf32, #tpu.memory_space<vmem>>, %arg7: memref<1x128xf32, #tpu.memory_space<vmem>>, %arg8: memref<1x128xf32, #tpu.memory_space<vmem>>, %arg9: memref<1x128xf32, #tpu.memory_space<vmem>>, %arg10: memref<8x128xf32, #tpu.memory_space<vmem>>) attributes {dimension_semantics = [#tpu.dimension_semantics<parallel>], iteration_bounds = array<i64: 1>, scalar_prefetch = 0 : i64, scratch_operands = 0 : i64, tpu.core_type = #tpu.core_type<tc>, window_params = [{transform_indices = @transform_0, window_bounds = array<i64: 8, 128>}, {pipeline_mode = #tpu.pipeline_mode<synchronous>, transform_indices = @transform_1, window_bounds = array<i64: 128, 256>}, {pipeline_mode = #tpu.pipeline_mode<synchronous>, transform_indices = @transform_2, window_bounds = array<i64: 1, 256>}, {pipeline_mode = #tpu.pipeline_mode<synchronous>, transform_indices = @transform_3, window_bounds = array<i64: 1, 256, 256>}, {pipeline_mode = #tpu.pipeline_mode<synchronous>, transform_indices = @transform_4, window_bounds = array<i64: 1, 1, 256>}, {pipeline_mode = #tpu.pipeline_mode<synchronous>, transform_indices = @transform_5, window_bounds = array<i64: 256, 128>}, {pipeline_mode = #tpu.pipeline_mode<synchronous>, transform_indices = @transform_6, window_bounds = array<i64: 1, 128>}, {pipeline_mode = #tpu.pipeline_mode<synchronous>, transform_indices = @transform_7, window_bounds = array<i64: 1, 128>}, {pipeline_mode = #tpu.pipeline_mode<synchronous>, transform_indices = @transform_8, window_bounds = array<i64: 1, 128>}, {transform_indices = @transform_9, window_bounds = array<i64: 8, 128>}]} {
    %c0 = arith.constant 0 : index
    %c0_0 = arith.constant 0 : index
    %0 = vector.load %arg1[%c0, %c0_0] : memref<8x128xf32, #tpu.memory_space<vmem>>, vector<8x128xf32>
    %c0_1 = arith.constant 0 : index
    %c0_2 = arith.constant 0 : index
    %1 = vector.load %arg2[%c0_1, %c0_2] : memref<128x256xf32, #tpu.memory_space<vmem>>, vector<128x256xf32>
    %cst = arith.constant dense<0.000000e+00> : vector<8x256xf32>
    %2 = tpu.matmul %0, %1, %cst {dimension_numbers = #tpu.dot_dimension_numbers<[1], [0], [0], [1], [0, 0, 1, 1], [], []>} : vector<8x128xf32>, vector<128x256xf32>, vector<8x256xf32> -> vector<8x256xf32>
    %c0_3 = arith.constant 0 : index
    %c0_4 = arith.constant 0 : index
    %3 = vector.load %arg3[%c0_3, %c0_4] : memref<1x256xf32, #tpu.memory_space<vmem>>, vector<1x256xf32>
    %4 = vector.broadcast %3 : vector<1x256xf32> to vector<8x256xf32>
    %5 = arith.addf %2, %4 : vector<8x256xf32>
    %6 = math.tanh %5 : vector<8x256xf32>
    %c0_5 = arith.constant 0 : index
    %c0_6 = arith.constant 0 : index
    %c0_7 = arith.constant 0 : index
    %7 = vector.load %arg4[%c0_5, %c0_6, %c0_7] : memref<1x256x256xf32, #tpu.memory_space<vmem>>, vector<1x256x256xf32>
    %8 = vector.shape_cast %7 : vector<1x256x256xf32> to vector<256x256xf32>
    %cst_8 = arith.constant dense<0.000000e+00> : vector<8x256xf32>
    %9 = tpu.matmul %6, %8, %cst_8 {dimension_numbers = #tpu.dot_dimension_numbers<[1], [0], [0], [1], [0, 0, 1, 1], [], []>} : vector<8x256xf32>, vector<256x256xf32>, vector<8x256xf32> -> vector<8x256xf32>
    %c0_9 = arith.constant 0 : index
    %c0_10 = arith.constant 0 : index
    %c0_11 = arith.constant 0 : index
    %10 = vector.load %arg5[%c0_9, %c0_10, %c0_11] : memref<1x1x256xf32, #tpu.memory_space<vmem>>, vector<1x1x256xf32>
    %11 = vector.shape_cast %10 : vector<1x1x256xf32> to vector<1x256xf32>
    %12 = vector.broadcast %11 : vector<1x256xf32> to vector<8x256xf32>
    %13 = arith.addf %9, %12 : vector<8x256xf32>
    %14 = math.tanh %13 : vector<8x256xf32>
    %c0_12 = arith.constant 0 : index
    %c0_13 = arith.constant 0 : index
    %15 = vector.load %arg6[%c0_12, %c0_13] : memref<256x128xf32, #tpu.memory_space<vmem>>, vector<256x128xf32>
    %cst_14 = arith.constant dense<0.000000e+00> : vector<8x128xf32>
    %16 = tpu.matmul %14, %15, %cst_14 {dimension_numbers = #tpu.dot_dimension_numbers<[1], [0], [0], [1], [0, 0, 1, 1], [], []>} : vector<8x256xf32>, vector<256x128xf32>, vector<8x128xf32> -> vector<8x128xf32>
    %c0_15 = arith.constant 0 : index
    %c0_16 = arith.constant 0 : index
    %17 = vector.load %arg7[%c0_15, %c0_16] : memref<1x128xf32, #tpu.memory_space<vmem>>, vector<1x128xf32>
    %18 = vector.broadcast %17 : vector<1x128xf32> to vector<8x128xf32>
    %19 = arith.addf %16, %18 : vector<8x128xf32>
    %20 = arith.negf %19 : vector<8x128xf32>
    %21 = math.exp %20 : vector<8x128xf32>
    %cst_17 = arith.constant 1.000000e+00 : f32
    %22 = vector.broadcast %cst_17 : f32 to vector<8x128xf32>
    %23 = arith.addf %22, %21 : vector<8x128xf32>
    %24 = arith.divf %22, %23 : vector<8x128xf32>
    %c0_18 = arith.constant 0 : index
    %c0_19 = arith.constant 0 : index
    %25 = vector.load %arg8[%c0_18, %c0_19] : memref<1x128xf32, #tpu.memory_space<vmem>>, vector<1x128xf32>
    %26 = vector.broadcast %25 : vector<1x128xf32> to vector<8x128xf32>
    %27 = arith.mulf %24, %26 : vector<8x128xf32>
    %c0_20 = arith.constant 0 : index
    %c0_21 = arith.constant 0 : index
    %28 = vector.load %arg9[%c0_20, %c0_21] : memref<1x128xf32, #tpu.memory_space<vmem>>, vector<1x128xf32>
    %29 = vector.broadcast %28 : vector<1x128xf32> to vector<8x128xf32>
    %30 = arith.addf %27, %29 : vector<8x128xf32>
    %c0_22 = arith.constant 0 : index
    %c0_23 = arith.constant 0 : index
    %31 = vector.load %arg10[%c0_22, %c0_23] : memref<8x128xf32, #tpu.memory_space<vmem>>, vector<8x128xf32>
    tpu.vector_store %arg10[%c0_22, %c0_23], %30 {strides = array<i32>} : memref<8x128xf32, #tpu.memory_space<vmem>>, vector<8x128xf32>,
    return
  }
  func.func @transform_0(%arg0: i32) -> (i32, i32) {
    %c0_i32 = arith.constant 0 : i32
    %c0_i32_0 = arith.constant 0 : i32
    return %arg0, %c0_i32 : i32, i32
  }
  func.func @transform_1(%arg0: i32) -> (i32, i32) {
    %c0_i32 = arith.constant 0 : i32
    %c0_i32_0 = arith.constant 0 : i32
    %c0_i32_1 = arith.constant 0 : i32
    return %c0_i32, %c0_i32_0 : i32, i32
  }
  func.func @transform_2(%arg0: i32) -> (i32, i32) {
    %c0_i32 = arith.constant 0 : i32
    %c0_i32_0 = arith.constant 0 : i32
    %c0_i32_1 = arith.constant 0 : i32
    return %c0_i32, %c0_i32_0 : i32, i32
  }
  func.func @transform_3(%arg0: i32) -> (i32, i32, i32) {
    %c0_i32 = arith.constant 0 : i32
    %c0_i32_0 = arith.constant 0 : i32
    %c0_i32_1 = arith.constant 0 : i32
    %c0_i32_2 = arith.constant 0 : i32
    return %c0_i32, %c0_i32_0, %c0_i32_1 : i32, i32, i32
  }
  func.func @transform_4(%arg0: i32) -> (i32, i32, i32) {
    %c0_i32 = arith.constant 0 : i32
    %c0_i32_0 = arith.constant 0 : i32
    %c0_i32_1 = arith.constant 0 : i32
    %c0_i32_2 = arith.constant 0 : i32
    return %c0_i32, %c0_i32_0, %c0_i32_1 : i32, i32, i32
  }
  func.func @transform_5(%arg0: i32) -> (i32, i32) {
    %c0_i32 = arith.constant 0 : i32
    %c0_i32_0 = arith.constant 0 : i32
    %c0_i32_1 = arith.constant 0 : i32
    return %c0_i32, %c0_i32_0 : i32, i32
  }
  func.func @transform_6(%arg0: i32) -> (i32, i32) {
    %c0_i32 = arith.constant 0 : i32
    %c0_i32_0 = arith.constant 0 : i32
    %c0_i32_1 = arith.constant 0 : i32
    return %c0_i32, %c0_i32_0 : i32, i32
  }
  func.func @transform_7(%arg0: i32) -> (i32, i32) {
    %c0_i32 = arith.constant 0 : i32
    %c0_i32_0 = arith.constant 0 : i32
    %c0_i32_1 = arith.constant 0 : i32
    return %c0_i32, %c0_i32_0 : i32, i32
  }
  func.func @transform_8(%arg0: i32) -> (i32, i32) {
    %c0_i32 = arith.constant 0 : i32
    %c0_i32_0 = arith.constant 0 : i32
    %c0_i32_1 = arith.constant 0 : i32
    return %c0_i32, %c0_i32_0 : i32, i32
  }
  func.func @transform_9(%arg0: i32) -> (i32, i32) {
    %c0_i32 = arith.constant 0 : i32
    %c0_i32_0 = arith.constant 0 : i32
    return %arg0, %c0_i32 : i32, i32
  }
}

module attributes {stable_mosaic.version = 11 : i64} {
  func.func @_made_fused_kernel(%arg0: i32, %arg1: memref<8x128xf32, #tpu.memory_space<vmem>>, %arg2: memref<128x256xf32, #tpu.memory_space<vmem>>, %arg3: memref<1x256xf32, #tpu.memory_space<vmem>>, %arg4: memref<1x256x256xf32, #tpu.memory_space<vmem>>, %arg5: memref<1x1x256xf32, #tpu.memory_space<vmem>>, %arg6: memref<256x128xf32, #tpu.memory_space<vmem>>, %arg7: memref<1x128xf32, #tpu.memory_space<vmem>>, %arg8: memref<1x128xf32, #tpu.memory_space<vmem>>, %arg9: memref<1x128xf32, #tpu.memory_space<vmem>>, %arg10: memref<8x128xf32, #tpu.memory_space<vmem>>) attributes {dimension_semantics = [#tpu.dimension_semantics<parallel>], iteration_bounds = array<i64: 1>, scalar_prefetch = 0 : i64, scratch_operands = 0 : i64, tpu.core_type = #tpu.core_type<tc>, window_params = [{transform_indices = @transform_0, window_bounds = array<i64: 8, 128>}, {pipeline_mode = #tpu.pipeline_mode<synchronous>, transform_indices = @transform_1, window_bounds = array<i64: 128, 256>}, {pipeline_mode = #tpu.pipeline_mode<synchronous>, transform_indices = @transform_2, window_bounds = array<i64: 1, 256>}, {pipeline_mode = #tpu.pipeline_mode<synchronous>, transform_indices = @transform_3, window_bounds = array<i64: 1, 256, 256>}, {pipeline_mode = #tpu.pipeline_mode<synchronous>, transform_indices = @transform_4, window_bounds = array<i64: 1, 1, 256>}, {pipeline_mode = #tpu.pipeline_mode<synchronous>, transform_indices = @transform_5, window_bounds = array<i64: 256, 128>}, {pipeline_mode = #tpu.pipeline_mode<synchronous>, transform_indices = @transform_6, window_bounds = array<i64: 1, 128>}, {pipeline_mode = #tpu.pipeline_mode<synchronous>, transform_indices = @transform_7, window_bounds = array<i64: 1, 128>}, {pipeline_mode = #tpu.pipeline_mode<synchronous>, transform_indices = @transform_8, window_bounds = array<i64: 1, 128>}, {transform_indices = @transform_9, window_bounds = array<i64: 8, 128>}]} {
    %c0 = arith.constant 0 : index
    %c0_0 = arith.constant 0 : index
    %0 = vector.load %arg1[%c0, %c0_0] : memref<8x128xf32, #tpu.memory_space<vmem>>, vector<8x128xf32>
    %c0_1 = arith.constant 0 : index
    %c0_2 = arith.constant 0 : index
    %1 = vector.load %arg2[%c0_1, %c0_2] : memref<128x256xf32, #tpu.memory_space<vmem>>, vector<128x256xf32>
    %cst = arith.constant dense<0.000000e+00> : vector<8x256xf32>
    %2 = tpu.matmul %0, %1, %cst {dimension_numbers = #tpu.dot_dimension_numbers<[1], [0], [0], [1], [0, 0, 1, 1], [], []>} : vector<8x128xf32>, vector<128x256xf32>, vector<8x256xf32> -> vector<8x256xf32>
    %c0_3 = arith.constant 0 : index
    %c0_4 = arith.constant 0 : index
    %3 = vector.load %arg3[%c0_3, %c0_4] : memref<1x256xf32, #tpu.memory_space<vmem>>, vector<1x256xf32>
    %4 = vector.broadcast %3 : vector<1x256xf32> to vector<8x256xf32>
    %5 = arith.addf %2, %4 : vector<8x256xf32>
    %6 = math.tanh %5 : vector<8x256xf32>
    %c0_5 = arith.constant 0 : index
    %c0_6 = arith.constant 0 : index
    %c0_7 = arith.constant 0 : index
    %7 = vector.load %arg4[%c0_5, %c0_6, %c0_7] : memref<1x256x256xf32, #tpu.memory_space<vmem>>, vector<1x256x256xf32>
    %8 = vector.shape_cast %7 : vector<1x256x256xf32> to vector<256x256xf32>
    %cst_8 = arith.constant dense<0.000000e+00> : vector<8x256xf32>
    %9 = tpu.matmul %6, %8, %cst_8 {dimension_numbers = #tpu.dot_dimension_numbers<[1], [0], [0], [1], [0, 0, 1, 1], [], []>} : vector<8x256xf32>, vector<256x256xf32>, vector<8x256xf32> -> vector<8x256xf32>
    %c0_9 = arith.constant 0 : index
    %c0_10 = arith.constant 0 : index
    %c0_11 = arith.constant 0 : index
    %10 = vector.load %arg5[%c0_9, %c0_10, %c0_11] : memref<1x1x256xf32, #tpu.memory_space<vmem>>, vector<1x1x256xf32>
    %11 = vector.shape_cast %10 : vector<1x1x256xf32> to vector<1x256xf32>
    %12 = vector.broadcast %11 : vector<1x256xf32> to vector<8x256xf32>
    %13 = arith.addf %9, %12 : vector<8x256xf32>
    %14 = math.tanh %13 : vector<8x256xf32>
    %c0_12 = arith.constant 0 : index
    %c0_13 = arith.constant 0 : index
    %15 = vector.load %arg6[%c0_12, %c0_13] : memref<256x128xf32, #tpu.memory_space<vmem>>, vector<256x128xf32>
    %cst_14 = arith.constant dense<0.000000e+00> : vector<8x128xf32>
    %16 = tpu.matmul %14, %15, %cst_14 {dimension_numbers = #tpu.dot_dimension_numbers<[1], [0], [0], [1], [0, 0, 1, 1], [], []>} : vector<8x256xf32>, vector<256x128xf32>, vector<8x128xf32> -> vector<8x128xf32>
    %c0_15 = arith.constant 0 : index
    %c0_16 = arith.constant 0 : index
    %17 = vector.load %arg7[%c0_15, %c0_16] : memref<1x128xf32, #tpu.memory_space<vmem>>, vector<1x128xf32>
    %18 = vector.broadcast %17 : vector<1x128xf32> to vector<8x128xf32>
    %19 = arith.addf %16, %18 : vector<8x128xf32>
    %20 = arith.negf %19 : vector<8x128xf32>
    %21 = math.exp %20 : vector<8x128xf32>
    %cst_17 = arith.constant 1.000000e+00 : f32
    %22 = vector.broadcast %cst_17 : f32 to vector<8x128xf32>
    %23 = arith.addf %22, %21 : vector<8x128xf32>
    %24 = arith.divf %22, %23 : vector<8x128xf32>
    %c0_18 = arith.constant 0 : index
    %c0_19 = arith.constant 0 : index
    %25 = vector.load %arg8[%c0_18, %c0_19] : memref<1x128xf32, #tpu.memory_space<vmem>>, vector<1x128xf32>
    %26 = vector.broadcast %25 : vector<1x128xf32> to vector<8x128xf32>
    %27 = arith.mulf %24, %26 : vector<8x128xf32>
    %c0_20 = arith.constant 0 : index
    %c0_21 = arith.constant 0 : index
    %28 = vector.load %arg9[%c0_20, %c0_21] : memref<1x128xf32, #tpu.memory_space<vmem>>, vector<1x128xf32>
    %29 = vector.broadcast %28 : vector<1x128xf32> to vector<8x128xf32>
    %30 = arith.addf %27, %29 : vector<8x128xf32>
    %c0_22 = arith.constant 0 : index
    %c0_23 = arith.constant 0 : index
    %31 = vector.load %arg10[%c0_22, %c0_23] : memref<8x128xf32, #tpu.memory_space<vmem>>, vector<8x128xf32>
    tpu.vector_store %arg10[%c0_22, %c0_23], %30 {strides = array<i32>} : memref<8x128xf32, #tpu.memory_space<vmem>>, vector<8x128xf32>,
    return
  }
  func.func @transform_0(%arg0: i32) -> (i32, i32) {
    %c0_i32 = arith.constant 0 : i32
    %c0_i32_0 = arith.constant 0 : i32
    return %arg0, %c0_i32 : i32, i32
  }
  func.func @transform_1(%arg0: i32) -> (i32, i32) {
    %c0_i32 = arith.constant 0 : i32
    %c0_i32_0 = arith.constant 0 : i32
    %c0_i32_1 = arith.constant 0 : i32
    return %c0_i32, %c0_i32_0 : i32, i32
  }
  func.func @transform_2(%arg0: i32) -> (i32, i32) {
    %c0_i32 = arith.constant 0 : i32
    %c0_i32_0 = arith.constant 0 : i32
    %c0_i32_1 = arith.constant 0 : i32
    return %c0_i32, %c0_i32_0 : i32, i32
  }
  func.func @transform_3(%arg0: i32) -> (i32, i32, i32) {
    %c0_i32 = arith.constant 0 : i32
    %c0_i32_0 = arith.constant 0 : i32
    %c0_i32_1 = arith.constant 0 : i32
    %c0_i32_2 = arith.constant 0 : i32
    return %c0_i32, %c0_i32_0, %c0_i32_1 : i32, i32, i32
  }
  func.func @transform_4(%arg0: i32) -> (i32, i32, i32) {
    %c0_i32 = arith.constant 0 : i32
    %c0_i32_0 = arith.constant 0 : i32
    %c0_i32_1 = arith.constant 0 : i32
    %c0_i32_2 = arith.constant 0 : i32
    return %c0_i32, %c0_i32_0, %c0_i32_1 : i32, i32, i32
  }
  func.func @transform_5(%arg0: i32) -> (i32, i32) {
    %c0_i32 = arith.constant 0 : i32
    %c0_i32_0 = arith.constant 0 : i32
    %c0_i32_1 = arith.constant 0 : i32
    return %c0_i32, %c0_i32_0 : i32, i32
  }
  func.func @transform_6(%arg0: i32) -> (i32, i32) {
    %c0_i32 = arith.constant 0 : i32
    %c0_i32_0 = arith.constant 0 : i32
    %c0_i32_1 = arith.constant 0 : i32
    return %c0_i32, %c0_i32_0 : i32, i32
  }
  func.func @transform_7(%arg0: i32) -> (i32, i32) {
    %c0_i32 = arith.constant 0 : i32
    %c0_i32_0 = arith.constant 0 : i32
    %c0_i32_1 = arith.constant 0 : i32
    return %c0_i32, %c0_i32_0 : i32, i32
  }
  func.func @transform_8(%arg0: i32) -> (i32, i32) {
    %c0_i32 = arith.constant 0 : i32
    %c0_i32_0 = arith.constant 0 : i32
    %c0_i32_1 = arith.constant 0 : i32
    return %c0_i32, %c0_i32_0 : i32, i32
  }
  func.func @transform_9(%arg0: i32) -> (i32, i32) {
    %c0_i32 = arith.constant 0 : i32
    %c0_i32_0 = arith.constant 0 : i32
    return %arg0, %c0_i32 : i32, i32
  }
}

</mosaic_0001>

<bundles_post_ra>
// kernel: tpu_custom_call.1
= control target key start
LH: loop header
LB: loop body
LE: loop exit
PB: predicated region body
PF: predicated region fallthrough
CT: control target
= control target key end

     0   :  { %14 = vsyncpa [#allocation3], 0  ;;  %s950_s0 = inlined_call_operand.hbm [shape: f32[8,128], index: 0, kind: input, shape index: {}]   ;;  %s951_s1 = inlined_call_operand.hbm [shape: f32[128,256], index: 1, kind: input, shape index: {}]   ;;  %s952_s2 = inlined_call_operand.vmem [shape: f32[1,256], index: 2, kind: input, shape index: {}]   ;;  %s953_s3 = inlined_call_operand.hbm [shape: f32[1,256,256], index: 3, kind: input, shape index: {}]   ;;  %s954_s4 = inlined_call_operand.vmem [shape: f32[1,1,256], index: 4, kind: input, shape index: {}]   ;;  %s955_s5 = inlined_call_operand.hbm [shape: f32[256,128], index: 5, kind: input, shape index: {}]   ;;  %s956_s6 = inlined_call_operand.vmem [shape: f32[1,128], index: 6, kind: input, shape index: {}]   ;;  %s957_s7 = inlined_call_operand.vmem [shape: f32[1,128], index: 7, kind: input, shape index: {}]   ;;  %s958_s8 = inlined_call_operand.vmem [shape: f32[1,128], index: 8, kind: input, shape index: {}]   ;;  %s959_s9 = inlined_call_operand.hbm [shape: f32[8,128], index: 9, kind: output, shape index: {}]  }
   0x1   :  { %15 = vsyncpa [#allocation6], 0 }
   0x2   :  { %16 = vsyncpa [#allocation9], 0 }
   0x3   :  { %17 = vsyncpa [#allocation4], 0  ;;  %s809_s30 = smov [#allocation5]   ;;  %s691_s13 = scalar_lea.hbm %s951_s1, 4096 }
   0x4   :  { %s33_s10 = sshll.u32 %s809_s30, 4  ;;  %p692_p0 = scmp.ne.s32.totalorder %s951_s1, %s691_s13  ;;  %s34_s10 = int_to_ptr.vmem [resolvable:$true] %s33_s10 }
   0x5   :  { %p695_p1 = scmp.lt.u32.totalorder %s691_s13, %s951_s1 }
   0x7   :  { %p697_p2 = pnand %p695_p1, %p692_p0 }
   0x9   :  { %700 = shalt.err (!%p697_p2)
}
   0xa   :  { %s701_s18 = scalar_lea.vmem %s34_s10, 4096  ;;  %p706_p4 = scmp.lt.s32.totalorder %s34_s10, %s34_s10 }
   0xb   :  { %p702_p3 = scmp.ne.s32.totalorder %s34_s10, %s701_s18  ;;  %p707_p5 = scmp.lt.s32.totalorder %s701_s18, %s701_s18 }
   0xd   :  { %p708_p6 = por %p707_p5, %p706_p4 }
   0xf   :  { %p709_p7 = pnand %p708_p6, %p702_p3 }
  0x11   :  { %712 = shalt.err (!%p709_p7)
}
  0x12   :  { %s810_s19 = smov 256   ;;  %s811_s20 = smov 16  }
  0x13   :  { %39 = dma.hbm_to_vmem [thread:$0]  %s951_s1, 4096, %s34_s10, [#allocation6], %s810_s19, %s810_s19, %s811_s20  }
  0x14   :  { %s812_s23 = smov [#allocation2]   ;;  %s813_s25 = smov [#allocation7]  }
  0x15   :  { %s24_s24 = sshll.u32 %s812_s23, 4  ;;  %s47_s26 = sshll.u32 %s813_s25, 4  ;;  %s25_s24 = int_to_ptr.vmem [resolvable:$true] %s24_s24  ;;  %s48_s26 = int_to_ptr.vmem [resolvable:$true] %s47_s26 }
  0x16   :  { %s713_s29 = scalar_lea.hbm %s950_s0, 128 }
  0x17   :  { %p714_p8 = scmp.ne.s32.totalorder %s950_s0, %s713_s29  ;;  %p717_p9 = scmp.lt.u32.totalorder %s713_s29, %s950_s0 }
  0x19   :  { %p719_p10 = pnand %p717_p9, %p714_p8 }
  0x1b   :  { %722 = shalt.err (!%p719_p10)
}
  0x1c   :  { %s723_s1 = scalar_lea.vmem %s25_s24, 128  ;;  %p728_p12 = scmp.lt.s32.totalorder %s25_s24, %s25_s24 }
  0x1d   :  { %p724_p11 = scmp.ne.s32.totalorder %s25_s24, %s723_s1  ;;  %p729_p13 = scmp.lt.s32.totalorder %s723_s1, %s723_s1 }
  0x1f   :  { %p730_p0 = por %p729_p13, %p728_p12 }
  0x21   :  { %p731_p1 = pnand %p730_p0, %p724_p11 }
  0x23   :  { %734 = shalt.err (!%p731_p1)
}
  0x24   :  { %27 = dma.hbm_to_vmem [thread:$0]  %s950_s0, 128, %s25_s24, [#allocation3]  }
  0x25   :  { %s735_s17 = scalar_lea.hbm %s953_s3, 8192 }
  0x26   :  { %p736_p2 = scmp.ne.s32.totalorder %s953_s3, %s735_s17  ;;  %p739_p3 = scmp.lt.u32.totalorder %s735_s17, %s953_s3 }
  0x28   :  { %p741_p4 = pnand %p739_p3, %p736_p2 }
  0x2a   :  { %744 = shalt.err (!%p741_p4)
}
  0x2b   :  { %s745_s25 = scalar_lea.vmem %s48_s26, 8192  ;;  %p750_p6 = scmp.lt.s32.totalorder %s48_s26, %s48_s26 }
  0x2c   :  { %p746_p5 = scmp.ne.s32.totalorder %s48_s26, %s745_s25  ;;  %p751_p7 = scmp.lt.s32.totalorder %s745_s25, %s745_s25 }
  0x2e   :  { %p752_p8 = por %p751_p7, %p750_p6 }
  0x30   :  { %p753_p9 = pnand %p752_p8, %p746_p5 }
  0x32   :  { %756 = shalt.err (!%p753_p9)
}
  0x33   :  { %53 = dma.hbm_to_vmem [thread:$0]  %s953_s3, 8192, %s48_s26, [#allocation6], %s810_s19, %s810_s19, %s811_s20  }
  0x34   :  { %s814_s27 = smov [#allocation8]   ;;  %s757_s11 = scalar_lea.hbm %s955_s5, 4096 }
  0x35   :  { %s61_s28 = sshll.u32 %s814_s27, 4  ;;  %p758_p10 = scmp.ne.s32.totalorder %s955_s5, %s757_s11  ;;  %s62_s28 = int_to_ptr.vmem [resolvable:$true] %s61_s28 }
  0x36   :  { %p761_p11 = scmp.lt.u32.totalorder %s757_s11, %s955_s5 }
  0x38   :  { %p763_p12 = pnand %p761_p11, %p758_p10 }
  0x3a   :  { %766 = shalt.err (!%p763_p12)
}
  0x3b   :  { %s767_s14 = scalar_lea.vmem %s62_s28, 4096  ;;  %p772_p0 = scmp.lt.s32.totalorder %s62_s28, %s62_s28 }
  0x3c   :  { %p768_p13 = scmp.ne.s32.totalorder %s62_s28, %s767_s14  ;;  %p773_p1 = scmp.lt.s32.totalorder %s767_s14, %s767_s14 }
  0x3e   :  { %p774_p2 = por %p773_p1, %p772_p0 }
  0x40   :  { %p775_p3 = pnand %p774_p2, %p768_p13 }
  0x42   :  { %778 = shalt.err (!%p775_p3)
}
  0x43   :  { %s815_s3 = smov 128   ;;  %s816_s19 = smov 8  }
  0x44   :  { %67 = dma.hbm_to_vmem [thread:$0]  %s955_s5, 4096, %s62_s28, [#allocation9], %s815_s3, %s815_s3, %s816_s19  }
  0x45   :  { %801 = dma.done.wait [#allocation3], 128  }
  0x46   :  { %802 = vsyncadd [#allocation3], 4294967168 }
  0x47   :  { %803 = dma.done.wait [#allocation6], 12288  }
  0x48   :  { %804 = vsyncadd [#allocation6], 4294955008 }
  0x49   :  { %805 = dma.done.wait [#allocation9], 4096  }
  0x4a   :  { %806 = vsyncadd [#allocation9], 4294963200  ;;  %v817_v0 = vmov 0.0   ;;  %v88_v1 = vld [vmem:[#allocation5 + $0x8] sm:$0xff]  ;;  %v90_v2 = vld [vmem:[#allocation5 + $0x18] sm:$0xff]  ;;  %s818_s25 = smov [#allocation10]  }
  0x4b   :  { %195 = vmatprep.mubr.f32.mxu0 %v817_v0  ;;  %v87_v3 = vld [vmem:[#allocation5] sm:$0xff]  ;;  %v541_v4 = vpack.c.bf16 %v90_v2, %v88_v1  ;;  %v89_v5 = vld [vmem:[#allocation5 + $0x10] sm:$0xff]  ;;  %v92_v6 = vld [vmem:[#allocation5 + $0x28] sm:$0xff]  ;;  %s491_s0 = sshll.u32 %s818_s25, 4  ;;  %s492_s0 = int_to_ptr.vmem [resolvable:$true] %s491_s0 }
  0x4c   :  { %v94_v7 = vld [vmem:[#allocation5 + $0x38] sm:$0xff]  ;;  %v543_v8 = vpack.c.bf16 %v89_v5, %v87_v3  ;;  %v91_v10 = vld [vmem:[#allocation5 + $0x20] sm:$0xff]  ;;  %v93_v11 = vld [vmem:[#allocation5 + $0x30] sm:$0xff]  ;;  %p784_p5 = scmp.lt.s32.totalorder %s492_s0, %s492_s0 }
  0x4d   :  { %v545_v9 = vpack.c.bf16 %v94_v7, %v92_v6  ;;  %v96_v12 = vld [vmem:[#allocation5 + $0x48] sm:$0xff]  ;;  %542 = vmatprep.subr.bf16.mxu0 %v541_v4  ;;  %v98_v13 = vld [vmem:[#allocation5 + $0x58] sm:$0xff]  ;;  %v547_v14 = vpack.c.bf16 %v93_v11, %v91_v10  ;;  %v95_v16 = vld [vmem:[#allocation5 + $0x40] sm:$0xff] }
  0x4e   :  { %544 = vmatpush1.bf16.msra.mxu0 %v543_v8  ;;  %v549_v15 = vpack.c.bf16 %v98_v13, %v96_v12  ;;  %v97_v17 = vld [vmem:[#allocation5 + $0x50] sm:$0xff]  ;;  %v100_v18 = vld [vmem:[#allocation5 + $0x68] sm:$0xff]  ;;  %v102_v19 = vld [vmem:[#allocation5 + $0x78] sm:$0xff] }
  0x4f   :  { %546 = vmatprep.subr.bf16.mxu0 %v545_v9  ;;  %v551_v20 = vpack.c.bf16 %v97_v17, %v95_v16  ;;  %v553_v21 = vpack.c.bf16 %v102_v19, %v100_v18  ;;  %v99_v22 = vld [vmem:[#allocation5 + $0x60] sm:$0xff]  ;;  %v101_v23 = vld [vmem:[#allocation5 + $0x70] sm:$0xff]  ;;  %v104_v24 = vld [vmem:[#allocation5 + $0x88] sm:$0xff] }
  0x50   :  { %v106_v25 = vld [vmem:[#allocation5 + $0x98] sm:$0xff]  ;;  %v103_v26 = vld [vmem:[#allocation5 + $0x80] sm:$0xff]  ;;  %v105_v27 = vld [vmem:[#allocation5 + $0x90] sm:$0xff]  ;;  %v555_v31 = vpack.c.bf16 %v101_v23, %v99_v22 }
  0x51   :  { %v205_v28 = vld [vmem:[#allocation7 + $0x8] sm:$0xff]  ;;  %v207_v29 = vld [vmem:[#allocation7 + $0x18] sm:$0xff]  ;;  %v204_v30 = vld [vmem:[#allocation7] sm:$0xff]  ;;  %v557_v36 = vpack.c.bf16 %v106_v25, %v104_v24  ;;  %v559_v46 = vpack.c.bf16 %v105_v27, %v103_v26 }
  0x52   :  { %548 = vmatpush1.bf16.msra.mxu0 %v547_v14  ;;  %v573_v32 = vpack.c.bf16 %v207_v29, %v205_v28  ;;  %v206_v33 = vld [vmem:[#allocation7 + $0x10] sm:$0xff]  ;;  %v209_v34 = vld [vmem:[#allocation7 + $0x28] sm:$0xff]  ;;  %v211_v35 = vld [vmem:[#allocation7 + $0x38] sm:$0xff] }
  0x53   :  { %550 = vmatprep.subr.bf16.mxu0 %v549_v15  ;;  %v575_v37 = vpack.c.bf16 %v206_v33, %v204_v30  ;;  %v577_v38 = vpack.c.bf16 %v211_v35, %v209_v34  ;;  %v208_v39 = vld [vmem:[#allocation7 + $0x20] sm:$0xff]  ;;  %v210_v40 = vld [vmem:[#allocation7 + $0x30] sm:$0xff]  ;;  %v213_v41 = vld [vmem:[#allocation7 + $0x48] sm:$0xff] }
  0x54   :  { %v108_v42 = vld [vmem:[#allocation5 + $0xa8] sm:$0xff]  ;;  %v110_v43 = vld [vmem:[#allocation5 + $0xb8] sm:$0xff]  ;;  %574 = vmatprep.subr.bf16.mxu1 %v573_v32  ;;  %v579_v45 = vpack.c.bf16 %v210_v40, %v208_v39  ;;  %v107_v47 = vld [vmem:[#allocation5 + $0xa0] sm:$0xff] }
  0x55   :  { %v215_v44 = vld [vmem:[#allocation7 + $0x58] sm:$0xff]  ;;  %576 = vmatpush1.bf16.msra.mxu1 %v575_v37  ;;  %v212_v49 = vld [vmem:[#allocation7 + $0x40] sm:$0xff]  ;;  %v214_v50 = vld [vmem:[#allocation7 + $0x50] sm:$0xff]  ;;  %v561_v51 = vpack.c.bf16 %v110_v43, %v108_v42 }
  0x56   :  { %552 = vmatpush1.bf16.msra.mxu0 %v551_v20  ;;  %578 = vmatprep.subr.bf16.mxu1 %v577_v38  ;;  %v581_v48 = vpack.c.bf16 %v215_v44, %v213_v41  ;;  %v109_v52 = vld [vmem:[#allocation5 + $0xb0] sm:$0xff]  ;;  %v217_v53 = vld [vmem:[#allocation7 + $0x68] sm:$0xff]  ;;  %v219_v54 = vld [vmem:[#allocation7 + $0x78] sm:$0xff]  ;;  %v583_v57 = vpack.c.bf16 %v214_v50, %v212_v49 }
  0x57   :  { %554 = vmatprep.subr.bf16.mxu0 %v553_v21  ;;  %v112_v55 = vld [vmem:[#allocation5 + $0xc8] sm:$0xff]  ;;  %v114_v56 = vld [vmem:[#allocation5 + $0xd8] sm:$0xff]  ;;  %v563_v58 = vpack.c.bf16 %v109_v52, %v107_v47  ;;  %v111_v59 = vld [vmem:[#allocation5 + $0xc0] sm:$0xff]  ;;  %v585_v60 = vpack.c.bf16 %v219_v54, %v217_v53 }
  0x58   :  { %v216_v61 = vld [vmem:[#allocation7 + $0x60] sm:$0xff]  ;;  %v218_v62 = vld [vmem:[#allocation7 + $0x70] sm:$0xff]  ;;  %v565_v63 = vpack.c.bf16 %v114_v56, %v112_v55  ;;  %v221_v1 = vld [vmem:[#allocation7 + $0x88] sm:$0xff] }
  0x59   :  { %580 = vmatpush1.bf16.msra.mxu1 %v579_v45  ;;  %v113_v0 = vld [vmem:[#allocation5 + $0xd0] sm:$0xff]  ;;  %v223_v2 = vld [vmem:[#allocation7 + $0x98] sm:$0xff]  ;;  %v116_v3 = vld [vmem:[#allocation5 + $0xe8] sm:$0xff]  ;;  %v587_v5 = vpack.c.bf16 %v218_v62, %v216_v61 }
  0x5a   :  { %556 = vmatpush1.bf16.msra.mxu0 %v555_v31  ;;  %582 = vmatprep.subr.bf16.mxu1 %v581_v48  ;;  %v118_v4 = vld [vmem:[#allocation5 + $0xf8] sm:$0xff]  ;;  %v567_v6 = vpack.c.bf16 %v113_v0, %v111_v59  ;;  %v115_v7 = vld [vmem:[#allocation5 + $0xe0] sm:$0xff]  ;;  %v589_v8 = vpack.c.bf16 %v223_v2, %v221_v1  ;;  %v222_v10 = vld [vmem:[#allocation7 + $0x90] sm:$0xff] }
  0x5b   :  { %558 = vmatprep.subr.bf16.mxu0 %v557_v36  ;;  %v220_v9 = vld [vmem:[#allocation7 + $0x80] sm:$0xff]  ;;  %v569_v11 = vpack.c.bf16 %v118_v4, %v116_v3  ;;  %v117_v12 = vld [vmem:[#allocation5 + $0xf0] sm:$0xff]  ;;  %v225_v13 = vld [vmem:[#allocation7 + $0xa8] sm:$0xff] }
  0x5c   :  { %v227_v14 = vld [vmem:[#allocation7 + $0xb8] sm:$0xff]  ;;  %v591_v15 = vpack.c.bf16 %v222_v10, %v220_v9  ;;  %v571_v16 = vpack.c.bf16 %v117_v12, %v115_v7  ;;  %v224_v18 = vld [vmem:[#allocation7 + $0xa0] sm:$0xff]  ;;  %v226_v19 = vld [vmem:[#allocation7 + $0xb0] sm:$0xff] }
  0x5d   :  { %584 = vmatpush1.bf16.msra.mxu1 %v583_v57  ;;  %v593_v17 = vpack.c.bf16 %v227_v14, %v225_v13  ;;  %v229_v20 = vld [vmem:[#allocation7 + $0xc8] sm:$0xff]  ;;  %v231_v21 = vld [vmem:[#allocation7 + $0xd8] sm:$0xff]  ;;  %v595_v22 = vpack.c.bf16 %v226_v19, %v224_v18  ;;  %v228_v25 = vld [vmem:[#allocation7 + $0xc0] sm:$0xff] }
  0x5e   :  { %560 = vmatpush1.bf16.msra.mxu0 %v559_v46  ;;  %586 = vmatprep.subr.bf16.mxu1 %v585_v60  ;;  %v86_v23 = vld [vmem:[#allocation2] sm:$0xff]  ;;  %v597_v24 = vpack.c.bf16 %v231_v21, %v229_v20  ;;  %v230_v26 = vld [vmem:[#allocation7 + $0xd0] sm:$0xff]  ;;  %v233_v27 = vld [vmem:[#allocation7 + $0xe8] sm:$0xff] }
  0x5f   :  { %562 = vmatprep.subr.bf16.mxu0 %v561_v51  ;;  %v235_v28 = vld [vmem:[#allocation7 + $0xf8] sm:$0xff]  ;;  %v599_v29 = vpack.c.bf16 %v230_v26, %v228_v25  ;;  %v232_v31 = vld [vmem:[#allocation7 + $0xe0] sm:$0xff]  ;;  %v234_v32 = vld [vmem:[#allocation7 + $0xf0] sm:$0xff] }
  0x60   :  { %v601_v30 = vpack.c.bf16 %v235_v28, %v233_v27  ;;  %v237_v33 = vld [vmem:[#allocation7 + $0x108] sm:$0xff]  ;;  %v239_v34 = vld [vmem:[#allocation7 + $0x118] sm:$0xff]  ;;  %v603_v35 = vpack.c.bf16 %v234_v32, %v232_v31  ;;  %v236_v37 = vld [vmem:[#allocation7 + $0x100] sm:$0xff] }
  0x61   :  { %588 = vmatpush1.bf16.msra.mxu1 %v587_v5  ;;  %v605_v36 = vpack.c.bf16 %v239_v34, %v237_v33  ;;  %v238_v38 = vld [vmem:[#allocation7 + $0x110] sm:$0xff]  ;;  %v241_v39 = vld [vmem:[#allocation7 + $0x128] sm:$0xff]  ;;  %v243_v40 = vld [vmem:[#allocation7 + $0x138] sm:$0xff] }
  0x62   :  { %564 = vmatpush1.bf16.msra.mxu0 %v563_v58  ;;  %590 = vmatprep.subr.bf16.mxu1 %v589_v8  ;;  %v607_v41 = vpack.c.bf16 %v238_v38, %v236_v37  ;;  %v609_v42 = vpack.c.bf16 %v243_v40, %v241_v39  ;;  %v240_v43 = vld [vmem:[#allocation7 + $0x120] sm:$0xff]  ;;  %v242_v44 = vld [vmem:[#allocation7 + $0x130] sm:$0xff]  ;;  %v245_v45 = vld [vmem:[#allocation7 + $0x148] sm:$0xff] }
  0x63   :  { %566 = vmatprep.subr.bf16.mxu0 %v565_v63  ;;  %v247_v46 = vld [vmem:[#allocation7 + $0x158] sm:$0xff]  ;;  %v611_v47 = vpack.c.bf16 %v242_v44, %v240_v43  ;;  %v244_v49 = vld [vmem:[#allocation7 + $0x140] sm:$0xff]  ;;  %v246_v50 = vld [vmem:[#allocation7 + $0x150] sm:$0xff] }
  0x64   :  { %v613_v48 = vpack.c.bf16 %v247_v46, %v245_v45  ;;  %v249_v51 = vld [vmem:[#allocation7 + $0x168] sm:$0xff]  ;;  %v251_v52 = vld [vmem:[#allocation7 + $0x178] sm:$0xff]  ;;  %v615_v53 = vpack.c.bf16 %v246_v50, %v244_v49  ;;  %v248_v55 = vld [vmem:[#allocation7 + $0x160] sm:$0xff] }
  0x65   :  { %592 = vmatpush1.bf16.msra.mxu1 %v591_v15  ;;  %v617_v54 = vpack.c.bf16 %v251_v52, %v249_v51  ;;  %v250_v56 = vld [vmem:[#allocation7 + $0x170] sm:$0xff]  ;;  %v253_v58 = vld [vmem:[#allocation7 + $0x188] sm:$0xff]  ;;  %v255_v59 = vld [vmem:[#allocation7 + $0x198] sm:$0xff] }
  0x66   :  { %568 = vmatpush1.bf16.msra.mxu0 %v567_v6  ;;  %594 = vmatprep.subr.bf16.mxu1 %v593_v17  ;;  %v619_v57 = vpack.c.bf16 %v250_v56, %v248_v55  ;;  %v621_v60 = vpack.c.bf16 %v255_v59, %v253_v58  ;;  %v252_v61 = vld [vmem:[#allocation7 + $0x180] sm:$0xff]  ;;  %v254_v62 = vld [vmem:[#allocation7 + $0x190] sm:$0xff]  ;;  %v257_v0 = vld [vmem:[#allocation7 + $0x1a8] sm:$0xff] }
  0x67   :  { %570 = vmatprep.subr.bf16.mxu0 %v569_v11  ;;  %v623_v63 = vpack.c.bf16 %v254_v62, %v252_v61  ;;  %v259_v1 = vld [vmem:[#allocation7 + $0x1b8] sm:$0xff]  ;;  %v256_v3 = vld [vmem:[#allocation7 + $0x1a0] sm:$0xff]  ;;  %v258_v4 = vld [vmem:[#allocation7 + $0x1b0] sm:$0xff] }
  0x68   :  { %v625_v2 = vpack.c.bf16 %v259_v1, %v257_v0  ;;  %v627_v5 = vpack.c.bf16 %v258_v4, %v256_v3  ;;  %v261_v6 = vld [vmem:[#allocation7 + $0x1c8] sm:$0xff]  ;;  %v263_v7 = vld [vmem:[#allocation7 + $0x1d8] sm:$0xff]  ;;  %v260_v8 = vld [vmem:[#allocation7 + $0x1c0] sm:$0xff] }
  0x69   :  { %596 = vmatpush1.bf16.msra.mxu1 %v595_v22  ;;  %v629_v9 = vpack.c.bf16 %v263_v7, %v261_v6  ;;  %v262_v10 = vld [vmem:[#allocation7 + $0x1d0] sm:$0xff]  ;;  %v265_v11 = vld [vmem:[#allocation7 + $0x1e8] sm:$0xff]  ;;  %v267_v12 = vld [vmem:[#allocation7 + $0x1f8] sm:$0xff] }
  0x6a   :  { %572 = vmatpush1.bf16.msra.mxu0 %v571_v16  ;;  %598 = vmatprep.subr.bf16.mxu1 %v597_v24  ;;  %v631_v13 = vpack.c.bf16 %v262_v10, %v260_v8  ;;  %v633_v14 = vpack.c.bf16 %v267_v12, %v265_v11  ;;  %v264_v15 = vld [vmem:[#allocation7 + $0x1e0] sm:$0xff]  ;;  %v266_v16 = vld [vmem:[#allocation7 + $0x1f0] sm:$0xff]  ;;  %v370_v19 = vld [vmem:[#allocation8 + $0x88] sm:$0xff] }
  0x6b   :  { %v635_v17 = vpack.c.bf16 %v266_v16, %v264_v15  ;;  %v369_v18 = vld [vmem:[#allocation8 + $0x80] sm:$0xff]  ;;  %v354_v22 = vld [vmem:[#allocation8 + $0x8] sm:$0xff]  ;;  %v372_v24 = vld [vmem:[#allocation8 + $0x98] sm:$0xff] }
  0x6c   :  { %v353_v20 = vld [vmem:[#allocation8] sm:$0xff]  ;;  %v637_v21 = vpack.c.bf16 %v370_v19, %v369_v18  ;;  %v355_v27 = vld [vmem:[#allocation8 + $0x10] sm:$0xff]  ;;  %v356_v28 = vld [vmem:[#allocation8 + $0x18] sm:$0xff] }
  0x6d   :  { %196 = vmatmul.mubr.f32.vlgmr.msra.gmra.mrb[0].mxu0 %v86_v23  ;;  %600 = vmatpush1.bf16.msra.mxu1 %v599_v29  ;;  %v371_v23 = vld [vmem:[#allocation8 + $0x90] sm:$0xff]  ;;  %v639_v25 = vpack.c.bf16 %v354_v22, %v353_v20  ;;  %v373_v29 = vld [vmem:[#allocation8 + $0xa0] sm:$0xff]  ;;  %v643_v31 = vpack.c.bf16 %v356_v28, %v355_v27  ;;  %v358_v34 = vld [vmem:[#allocation8 + $0x28] sm:$0xff] }
  0x6e   :  { %602 = vmatprep.subr.bf16.mxu1 %v601_v30  ;;  %v641_v26 = vpack.c.bf16 %v372_v24, %v371_v23  ;;  %638 = vmatprep.subr.bf16.mxu0 %v637_v21  ;;  %v374_v30 = vld [vmem:[#allocation8 + $0xa8] sm:$0xff]  ;;  %v357_v33 = vld [vmem:[#allocation8 + $0x20] sm:$0xff]  ;;  %v359_v39 = vld [vmem:[#allocation8 + $0x30] sm:$0xff] }
  0x6f   :  { %640 = vmatpush3.bf16.msra.mxu0 %v639_v25  ;;  %v645_v32 = vpack.c.bf16 %v374_v30, %v373_v29  ;;  %v647_v37 = vpack.c.bf16 %v358_v34, %v357_v33  ;;  %v360_v40 = vld [vmem:[#allocation8 + $0x38] sm:$0xff]  ;;  %v377_v55 = vld [vmem:[#allocation8 + $0xc0] sm:$0xff]  ;;  %v378_v56 = vld [vmem:[#allocation8 + $0xc8] sm:$0xff] }
  0x70   :  { %642 = vmatprep.subr.bf16.mxu0 %v641_v26  ;;  %v119_v45 = vld [vmem:[%s952_s2] sm:$0x3]  ;;  %v361_v58 = vld [vmem:[#allocation8 + $0x40] sm:$0xff]  ;;  %v362_v59 = vld [vmem:[#allocation8 + $0x48] sm:$0xff] }
  0x71   :  { %604 = vmatpush1.bf16.msra.mxu1 %v603_v35  ;;  %v375_v35 = vld [vmem:[#allocation8 + $0xb0] sm:$0xff]  ;;  %v380_v62 = vld [vmem:[#allocation8 + $0xd8] sm:$0xff]  ;;  %v381_v3 = vld [vmem:[#allocation8 + $0xe0] sm:$0xff] }
  0x72   :  { %606 = vmatprep.subr.bf16.mxu1 %v605_v36  ;;  %v376_v36 = vld [vmem:[#allocation8 + $0xb8] sm:$0xff]  ;;  %v379_v61 = vld [vmem:[#allocation8 + $0xd0] sm:$0xff]  ;;  %v382_v4 = vld [vmem:[#allocation8 + $0xe8] sm:$0xff] }
  0x73   :  { %644 = vmatpush3.bf16.msra.mxu0 %v643_v31  ;;  %v649_v38 = vpack.c.bf16 %v376_v36, %v375_v35  ;;  %v363_v0 = vld [vmem:[#allocation8 + $0x50] sm:$0xff]  ;;  %v364_v1 = vld [vmem:[#allocation8 + $0x58] sm:$0xff]  ;;  %v661_v6 = vpack.c.bf16 %v382_v4, %v381_v3  ;;  %v366_v7 = vld [vmem:[#allocation8 + $0x68] sm:$0xff] }
  0x74   :  { %646 = vmatprep.subr.bf16.mxu0 %v645_v32  ;;  %v383_v8 = vld [vmem:[#allocation8 + $0xf0] sm:$0xff]  ;;  %v268_v15 = vld [vmem:[%s954_s4] sm:$0x3] }
  0x75   :  { %608 = vmatpush1.bf16.msra.mxu1 %v607_v41  ;;  %v651_v41 = vpack.c.bf16 %v360_v40, %v359_v39  ;;  %v367_v12 = vld [vmem:[#allocation8 + $0x70] sm:$0xff]  ;;  %v502_v25 = vld [vmem:[%s956_s6] ss:$0 sm:$0xff]  ;;  %s779_s6 = scalar_lea.vmem %s492_s0, 128 }
  0x76   :  { %610 = vmatprep.subr.bf16.mxu1 %v609_v42  ;;  %v121_v42 = vlaneseq  ;;  %v504_v32 = vld [vmem:[%s957_s7] ss:$0 sm:$0xff]  ;;  %p780_p4 = scmp.ne.s32.totalorder %s492_s0, %s779_s6  ;;  %p785_p6 = scmp.lt.s32.totalorder %s779_s6, %s779_s6 }
  0x77   :  { %648 = vmatpush3.bf16.msra.mxu0 %v647_v37  ;;  %v505_v34 = vld [vmem:[%s958_s8] ss:$0 sm:$0xff] }
  0x78   :  { %650 = vmatprep.subr.bf16.mxu0 %v649_v38  ;;  %v122_v43 = vshrl.u32 %v121_v42, 7  ;;  %p786_p7 = por %p785_p6, %p784_p5 }
  0x79   :  { %612 = vmatpush1.bf16.msra.mxu1 %v611_v47 }
  0x7a   :  { %614 = vmatprep.subr.bf16.mxu1 %v613_v48  ;;  %v123_v44 = vsub.s32 0, %v122_v43  ;;  %v127_v46 = vsub.s32 1, %v122_v43  ;;  %p787_p8 = pnand %p786_p7, %p780_p4 }
  0x7b   :  { %652 = vmatpush3.bf16.msra.mxu0 %v651_v41 }
  0x7c   :  { %v124_v47 = vrot.slane %v119_v45, %v123_v44  ;;  %v128_v48 = vrot.slane %v119_v45, %v127_v46  ;;  %v273_v16 = vrot.slane %v268_v15, %v123_v44 }
  0x7d   :  { %616 = vmatpush1.bf16.msra.mxu1 %v615_v53 }
  0x7e   :  { %618 = vmatprep.subr.bf16.mxu1 %v617_v54 }
  0x81   :  { %620 = vmatpush1.bf16.msra.mxu1 %v619_v57  ;;  %v653_v57 = vpack.c.bf16 %v378_v56, %v377_v55 }
  0x82   :  { %622 = vmatprep.subr.bf16.mxu1 %v621_v60  ;;  %v655_v60 = vpack.c.bf16 %v362_v59, %v361_v58 }
  0x83   :  { %654 = vmatprep.subr.bf16.mxu0 %v653_v57 }
  0x84   :  { %656 = vmatpush3.bf16.msra.mxu0 %v655_v60 }
  0x85   :  { %624 = vmatpush1.bf16.msra.mxu1 %v623_v63  ;;  %v657_v63 = vpack.c.bf16 %v380_v62, %v379_v61 }
  0x86   :  { %626 = vmatprep.subr.bf16.mxu1 %v625_v2  ;;  %v659_v2 = vpack.c.bf16 %v364_v1, %v363_v0 }
  0x87   :  { %658 = vmatprep.subr.bf16.mxu0 %v657_v63 }
  0x88   :  { %660 = vmatpush3.bf16.msra.mxu0 %v659_v2 }
  0x89   :  { %628 = vmatpush1.bf16.msra.mxu1 %v627_v5  ;;  %v365_v5 = vld [vmem:[#allocation8 + $0x60] sm:$0xff]  ;;  %662 = vmatprep.subr.bf16.mxu0 %v661_v6 }
  0x8a   :  { %630 = vmatprep.subr.bf16.mxu1 %v629_v9  ;;  %v384_v9 = vld [vmem:[#allocation8 + $0xf8] sm:$0xff]  ;;  %v663_v10 = vpack.c.bf16 %v366_v7, %v365_v5 }
  0x8b   :  { %v665_v11 = vpack.c.bf16 %v384_v9, %v383_v8 }
  0x8c   :  { %664 = vmatpush3.bf16.msra.mxu0 %v663_v10 }
  0x8d   :  { %632 = vmatpush1.bf16.msra.mxu1 %v631_v13  ;;  %v368_v13 = vld [vmem:[#allocation8 + $0x78] sm:$0xff]  ;;  %666 = vmatprep.subr.bf16.mxu0 %v665_v11 }
  0x8e   :  { %634 = vmatprep.subr.bf16.mxu1 %v633_v14  ;;  %v667_v14 = vpack.c.bf16 %v368_v13, %v367_v12 }
  0x90   :  { %668 = vmatpush3.bf16.msra.mxu0 %v667_v14 }
  0x91   :  { %636 = vmatpush1.bf16.msra.mxu1 %v635_v17  ;;  %v277_v17 = vrot.slane %v268_v15, %v127_v46 }
 0x140   :  { %v197_v49 = vpop.f32.mrb[0].mxu0 }
 0x141   :  { %v198_v50 = vadd.f32 %v197_v49, %v124_v47  ;;  %v199_v51 = vpop.f32.mrb[1].mxu0 }
 0x142   :  { %v200_v52 = vadd.f32 %v199_v51, %v128_v48 }
 0x144   :  { %679 = vtanh.f32 %v200_v52 }
 0x145   :  { %681 = vtanh.f32 %v198_v50 }
 0x14e   :  { %v680_v53 = vpop.eup %679 }
 0x14f   :  { %v682_v54 = vpop.eup %681  ;;  %344 = vmatprep.mubr.f32.mxu1 %v680_v53 }
 0x150   :  { %345 = vmatmul.mubr.f32.vlgmr.msra.gmra.mrb[0].mxu1 %v682_v54 }
 0x223   :  { %v346_v18 = vpop.f32.mrb[0].mxu1 }
 0x224   :  { %v347_v19 = vadd.f32 %v346_v18, %v273_v16  ;;  %v348_v20 = vpop.f32.mrb[1].mxu1 }
 0x225   :  { %v349_v21 = vadd.f32 %v348_v20, %v277_v17 }
 0x227   :  { %683 = vtanh.f32 %v349_v21 }
 0x228   :  { %685 = vtanh.f32 %v347_v19 }
 0x231   :  { %v684_v22 = vpop.eup %683 }
 0x232   :  { %v686_v23 = vpop.eup %685  ;;  %456 = vmatprep.mubr.f32.mxu0 %v684_v22 }
 0x233   :  { %457 = vmatmul.mubr.f32.vlgmr.msra.gmra.mrb[2].mxu0 %v686_v23 }
 0x306   :  { %v538_v24 = vpop.f32.mrb[2].mxu0 }
 0x307   :  { %v539_v26 = vpop.f32.mrb[3].mxu0 }
 0x308   :  { %v540_v27 = vadd.f32 %v539_v26, %v538_v24 }
 0x30a   :  { %v459_v28 = vadd.f32 %v540_v27, %v502_v25 }
 0x30c   :  { %v503_v29 = vmul.f32 -1.442695, %v459_v28 }
 0x30e   :  { %687 = vpow2.f32 %v503_v29 }
 0x318   :  { %v688_v30 = vpop.eup %687 }
 0x319   :  { %v465_v31 = vadd.f32 1.0, %v688_v30 }
 0x31b   :  { %689 = vrcp.f32 %v465_v31 }
 0x325   :  { %v690_v33 = vpop.eup %689 }
 0x326   :  { %v475_v35 = vmul.f32 %v690_v33, %v504_v32 }
 0x328   :  { %v483_v36 = vadd.f32 %v505_v34, %v475_v35 }
 0x32a   :  { %484 = vst [vmem:[#allocation10] sm:$0xff] %v483_v36 }
 0x32b   :  { %790 = shalt.err (!%p787_p8)
}
 0x32c   :  { %s791_s27 = scalar_lea.hbm %s959_s9, 128 }
 0x32d   :  { %p792_p9 = scmp.ne.s32.totalorder %s959_s9, %s791_s27  ;;  %p795_p10 = scmp.lt.u32.totalorder %s791_s27, %s959_s9 }
 0x32f   :  { %p797_p11 = pnand %p795_p10, %p792_p9 }
 0x331   :  { %800 = shalt.err (!%p797_p11)
}
 0x332   :  { %494 = dma.vmem_to_hbm [thread:$0]  %s492_s0, 128, %s959_s9, [#allocation4]  }
 0x333   :  { %807 = dma.done.wait [#allocation4], 128  }
 0x334   :  { %808 = vsyncadd [#allocation4], 4294967168 }
 0x335   :  { %498 = vsyncpa [#allocation3], 1 }
 0x336   :  { %499 = vsyncpa [#allocation6], 1 }
 0x337   :  { %500 = vsyncpa [#allocation9], 1 }
 0x338   :  { %501 = vsyncpa [#allocation4], 1 }

// kernel: tpu_custom_call.1
= control target key start
LH: loop header
LB: loop body
LE: loop exit
PB: predicated region body
PF: predicated region fallthrough
CT: control target
= control target key end

     0   :  { %14 = vsyncpa [#allocation3], 0  ;;  %s950_s0 = inlined_call_operand.hbm [shape: f32[8,128], index: 0, kind: input, shape index: {}]   ;;  %s951_s1 = inlined_call_operand.hbm [shape: f32[128,256], index: 1, kind: input, shape index: {}]   ;;  %s952_s2 = inlined_call_operand.vmem [shape: f32[1,256], index: 2, kind: input, shape index: {}]   ;;  %s953_s3 = inlined_call_operand.hbm [shape: f32[1,256,256], index: 3, kind: input, shape index: {}]   ;;  %s954_s4 = inlined_call_operand.vmem [shape: f32[1,1,256], index: 4, kind: input, shape index: {}]   ;;  %s955_s5 = inlined_call_operand.hbm [shape: f32[256,128], index: 5, kind: input, shape index: {}]   ;;  %s956_s6 = inlined_call_operand.vmem [shape: f32[1,128], index: 6, kind: input, shape index: {}]   ;;  %s957_s7 = inlined_call_operand.vmem [shape: f32[1,128], index: 7, kind: input, shape index: {}]   ;;  %s958_s8 = inlined_call_operand.vmem [shape: f32[1,128], index: 8, kind: input, shape index: {}]   ;;  %s959_s9 = inlined_call_operand.hbm [shape: f32[8,128], index: 9, kind: output, shape index: {}]  }
   0x1   :  { %15 = vsyncpa [#allocation6], 0 }
   0x2   :  { %16 = vsyncpa [#allocation9], 0 }
   0x3   :  { %17 = vsyncpa [#allocation4], 0  ;;  %s809_s30 = smov [#allocation5]   ;;  %s691_s13 = scalar_lea.hbm %s951_s1, 4096 }
   0x4   :  { %s33_s10 = sshll.u32 %s809_s30, 4  ;;  %p692_p0 = scmp.ne.s32.totalorder %s951_s1, %s691_s13  ;;  %s34_s10 = int_to_ptr.vmem [resolvable:$true] %s33_s10 }
   0x5   :  { %p695_p1 = scmp.lt.u32.totalorder %s691_s13, %s951_s1 }
   0x7   :  { %p697_p2 = pnand %p695_p1, %p692_p0 }
   0x9   :  { %700 = shalt.err (!%p697_p2)
}
   0xa   :  { %s701_s18 = scalar_lea.vmem %s34_s10, 4096  ;;  %p706_p4 = scmp.lt.s32.totalorder %s34_s10, %s34_s10 }
   0xb   :  { %p702_p3 = scmp.ne.s32.totalorder %s34_s10, %s701_s18  ;;  %p707_p5 = scmp.lt.s32.totalorder %s701_s18, %s701_s18 }
   0xd   :  { %p708_p6 = por %p707_p5, %p706_p4 }
   0xf   :  { %p709_p7 = pnand %p708_p6, %p702_p3 }
  0x11   :  { %712 = shalt.err (!%p709_p7)
}
  0x12   :  { %s810_s19 = smov 256   ;;  %s811_s20 = smov 16  }
  0x13   :  { %39 = dma.hbm_to_vmem [thread:$0]  %s951_s1, 4096, %s34_s10, [#allocation6], %s810_s19, %s810_s19, %s811_s20  }
  0x14   :  { %s812_s23 = smov [#allocation2]   ;;  %s813_s25 = smov [#allocation7]  }
  0x15   :  { %s24_s24 = sshll.u32 %s812_s23, 4  ;;  %s47_s26 = sshll.u32 %s813_s25, 4  ;;  %s25_s24 = int_to_ptr.vmem [resolvable:$true] %s24_s24  ;;  %s48_s26 = int_to_ptr.vmem [resolvable:$true] %s47_s26 }
  0x16   :  { %s713_s29 = scalar_lea.hbm %s950_s0, 128 }
  0x17   :  { %p714_p8 = scmp.ne.s32.totalorder %s950_s0, %s713_s29  ;;  %p717_p9 = scmp.lt.u32.totalorder %s713_s29, %s950_s0 }
  0x19   :  { %p719_p10 = pnand %p717_p9, %p714_p8 }
  0x1b   :  { %722 = shalt.err (!%p719_p10)
}
  0x1c   :  { %s723_s1 = scalar_lea.vmem %s25_s24, 128  ;;  %p728_p12 = scmp.lt.s32.totalorder %s25_s24, %s25_s24 }
  0x1d   :  { %p724_p11 = scmp.ne.s32.totalorder %s25_s24, %s723_s1  ;;  %p729_p13 = scmp.lt.s32.totalorder %s723_s1, %s723_s1 }
  0x1f   :  { %p730_p0 = por %p729_p13, %p728_p12 }
  0x21   :  { %p731_p1 = pnand %p730_p0, %p724_p11 }
  0x23   :  { %734 = shalt.err (!%p731_p1)
}
  0x24   :  { %27 = dma.hbm_to_vmem [thread:$0]  %s950_s0, 128, %s25_s24, [#allocation3]  }
  0x25   :  { %s735_s17 = scalar_lea.hbm %s953_s3, 8192 }
  0x26   :  { %p736_p2 = scmp.ne.s32.totalorder %s953_s3, %s735_s17  ;;  %p739_p3 = scmp.lt.u32.totalorder %s735_s17, %s953_s3 }
  0x28   :  { %p741_p4 = pnand %p739_p3, %p736_p2 }
  0x2a   :  { %744 = shalt.err (!%p741_p4)
}
  0x2b   :  { %s745_s25 = scalar_lea.vmem %s48_s26, 8192  ;;  %p750_p6 = scmp.lt.s32.totalorder %s48_s26, %s48_s26 }
  0x2c   :  { %p746_p5 = scmp.ne.s32.totalorder %s48_s26, %s745_s25  ;;  %p751_p7 = scmp.lt.s32.totalorder %s745_s25, %s745_s25 }
  0x2e   :  { %p752_p8 = por %p751_p7, %p750_p6 }
  0x30   :  { %p753_p9 = pnand %p752_p8, %p746_p5 }
  0x32   :  { %756 = shalt.err (!%p753_p9)
}
  0x33   :  { %53 = dma.hbm_to_vmem [thread:$0]  %s953_s3, 8192, %s48_s26, [#allocation6], %s810_s19, %s810_s19, %s811_s20  }
  0x34   :  { %s814_s27 = smov [#allocation8]   ;;  %s757_s11 = scalar_lea.hbm %s955_s5, 4096 }
  0x35   :  { %s61_s28 = sshll.u32 %s814_s27, 4  ;;  %p758_p10 = scmp.ne.s32.totalorder %s955_s5, %s757_s11  ;;  %s62_s28 = int_to_ptr.vmem [resolvable:$true] %s61_s28 }
  0x36   :  { %p761_p11 = scmp.lt.u32.totalorder %s757_s11, %s955_s5 }
  0x38   :  { %p763_p12 = pnand %p761_p11, %p758_p10 }
  0x3a   :  { %766 = shalt.err (!%p763_p12)
}
  0x3b   :  { %s767_s14 = scalar_lea.vmem %s62_s28, 4096  ;;  %p772_p0 = scmp.lt.s32.totalorder %s62_s28, %s62_s28 }
  0x3c   :  { %p768_p13 = scmp.ne.s32.totalorder %s62_s28, %s767_s14  ;;  %p773_p1 = scmp.lt.s32.totalorder %s767_s14, %s767_s14 }
  0x3e   :  { %p774_p2 = por %p773_p1, %p772_p0 }
  0x40   :  { %p775_p3 = pnand %p774_p2, %p768_p13 }
  0x42   :  { %778 = shalt.err (!%p775_p3)
}
  0x43   :  { %s815_s3 = smov 128   ;;  %s816_s19 = smov 8  }
  0x44   :  { %67 = dma.hbm_to_vmem [thread:$0]  %s955_s5, 4096, %s62_s28, [#allocation9], %s815_s3, %s815_s3, %s816_s19  }
  0x45   :  { %801 = dma.done.wait [#allocation3], 128  }
  0x46   :  { %802 = vsyncadd [#allocation3], 4294967168 }
  0x47   :  { %803 = dma.done.wait [#allocation6], 12288  }
  0x48   :  { %804 = vsyncadd [#allocation6], 4294955008 }
  0x49   :  { %805 = dma.done.wait [#allocation9], 4096  }
  0x4a   :  { %806 = vsyncadd [#allocation9], 4294963200  ;;  %v817_v0 = vmov 0.0   ;;  %v88_v1 = vld [vmem:[#allocation5 + $0x8] sm:$0xff]  ;;  %v90_v2 = vld [vmem:[#allocation5 + $0x18] sm:$0xff]  ;;  %s818_s25 = smov [#allocation10]  }
  0x4b   :  { %195 = vmatprep.mubr.f32.mxu0 %v817_v0  ;;  %v87_v3 = vld [vmem:[#allocation5] sm:$0xff]  ;;  %v541_v4 = vpack.c.bf16 %v90_v2, %v88_v1  ;;  %v89_v5 = vld [vmem:[#allocation5 + $0x10] sm:$0xff]  ;;  %v92_v6 = vld [vmem:[#allocation5 + $0x28] sm:$0xff]  ;;  %s491_s0 = sshll.u32 %s818_s25, 4  ;;  %s492_s0 = int_to_ptr.vmem [resolvable:$true] %s491_s0 }
  0x4c   :  { %v94_v7 = vld [vmem:[#allocation5 + $0x38] sm:$0xff]  ;;  %v543_v8 = vpack.c.bf16 %v89_v5, %v87_v3  ;;  %v91_v10 = vld [vmem:[#allocation5 + $0x20] sm:$0xff]  ;;  %v93_v11 = vld [vmem:[#allocation5 + $0x30] sm:$0xff]  ;;  %p784_p5 = scmp.lt.s32.totalorder %s492_s0, %s492_s0 }
  0x4d   :  { %v545_v9 = vpack.c.bf16 %v94_v7, %v92_v6  ;;  %v96_v12 = vld [vmem:[#allocation5 + $0x48] sm:$0xff]  ;;  %542 = vmatprep.subr.bf16.mxu0 %v541_v4  ;;  %v98_v13 = vld [vmem:[#allocation5 + $0x58] sm:$0xff]  ;;  %v547_v14 = vpack.c.bf16 %v93_v11, %v91_v10  ;;  %v95_v16 = vld [vmem:[#allocation5 + $0x40] sm:$0xff] }
  0x4e   :  { %544 = vmatpush1.bf16.msra.mxu0 %v543_v8  ;;  %v549_v15 = vpack.c.bf16 %v98_v13, %v96_v12  ;;  %v97_v17 = vld [vmem:[#allocation5 + $0x50] sm:$0xff]  ;;  %v100_v18 = vld [vmem:[#allocation5 + $0x68] sm:$0xff]  ;;  %v102_v19 = vld [vmem:[#allocation5 + $0x78] sm:$0xff] }
  0x4f   :  { %546 = vmatprep.subr.bf16.mxu0 %v545_v9  ;;  %v551_v20 = vpack.c.bf16 %v97_v17, %v95_v16  ;;  %v553_v21 = vpack.c.bf16 %v102_v19, %v100_v18  ;;  %v99_v22 = vld [vmem:[#allocation5 + $0x60] sm:$0xff]  ;;  %v101_v23 = vld [vmem:[#allocation5 + $0x70] sm:$0xff]  ;;  %v104_v24 = vld [vmem:[#allocation5 + $0x88] sm:$0xff] }
  0x50   :  { %v106_v25 = vld [vmem:[#allocation5 + $0x98] sm:$0xff]  ;;  %v103_v26 = vld [vmem:[#allocation5 + $0x80] sm:$0xff]  ;;  %v105_v27 = vld [vmem:[#allocation5 + $0x90] sm:$0xff]  ;;  %v555_v31 = vpack.c.bf16 %v101_v23, %v99_v22 }
  0x51   :  { %v205_v28 = vld [vmem:[#allocation7 + $0x8] sm:$0xff]  ;;  %v207_v29 = vld [vmem:[#allocation7 + $0x18] sm:$0xff]  ;;  %v204_v30 = vld [vmem:[#allocation7] sm:$0xff]  ;;  %v557_v36 = vpack.c.bf16 %v106_v25, %v104_v24  ;;  %v559_v46 = vpack.c.bf16 %v105_v27, %v103_v26 }
  0x52   :  { %548 = vmatpush1.bf16.msra.mxu0 %v547_v14  ;;  %v573_v32 = vpack.c.bf16 %v207_v29, %v205_v28  ;;  %v206_v33 = vld [vmem:[#allocation7 + $0x10] sm:$0xff]  ;;  %v209_v34 = vld [vmem:[#allocation7 + $0x28] sm:$0xff]  ;;  %v211_v35 = vld [vmem:[#allocation7 + $0x38] sm:$0xff] }
  0x53   :  { %550 = vmatprep.subr.bf16.mxu0 %v549_v15  ;;  %v575_v37 = vpack.c.bf16 %v206_v33, %v204_v30  ;;  %v577_v38 = vpack.c.bf16 %v211_v35, %v209_v34  ;;  %v208_v39 = vld [vmem:[#allocation7 + $0x20] sm:$0xff]  ;;  %v210_v40 = vld [vmem:[#allocation7 + $0x30] sm:$0xff]  ;;  %v213_v41 = vld [vmem:[#allocation7 + $0x48] sm:$0xff] }
  0x54   :  { %v108_v42 = vld [vmem:[#allocation5 + $0xa8] sm:$0xff]  ;;  %v110_v43 = vld [vmem:[#allocation5 + $0xb8] sm:$0xff]  ;;  %574 = vmatprep.subr.bf16.mxu1 %v573_v32  ;;  %v579_v45 = vpack.c.bf16 %v210_v40, %v208_v39  ;;  %v107_v47 = vld [vmem:[#allocation5 + $0xa0] sm:$0xff] }
  0x55   :  { %v215_v44 = vld [vmem:[#allocation7 + $0x58] sm:$0xff]  ;;  %576 = vmatpush1.bf16.msra.mxu1 %v575_v37  ;;  %v212_v49 = vld [vmem:[#allocation7 + $0x40] sm:$0xff]  ;;  %v214_v50 = vld [vmem:[#allocation7 + $0x50] sm:$0xff]  ;;  %v561_v51 = vpack.c.bf16 %v110_v43, %v108_v42 }
  0x56   :  { %552 = vmatpush1.bf16.msra.mxu0 %v551_v20  ;;  %578 = vmatprep.subr.bf16.mxu1 %v577_v38  ;;  %v581_v48 = vpack.c.bf16 %v215_v44, %v213_v41  ;;  %v109_v52 = vld [vmem:[#allocation5 + $0xb0] sm:$0xff]  ;;  %v217_v53 = vld [vmem:[#allocation7 + $0x68] sm:$0xff]  ;;  %v219_v54 = vld [vmem:[#allocation7 + $0x78] sm:$0xff]  ;;  %v583_v57 = vpack.c.bf16 %v214_v50, %v212_v49 }
  0x57   :  { %554 = vmatprep.subr.bf16.mxu0 %v553_v21  ;;  %v112_v55 = vld [vmem:[#allocation5 + $0xc8] sm:$0xff]  ;;  %v114_v56 = vld [vmem:[#allocation5 + $0xd8] sm:$0xff]  ;;  %v563_v58 = vpack.c.bf16 %v109_v52, %v107_v47  ;;  %v111_v59 = vld [vmem:[#allocation5 + $0xc0] sm:$0xff]  ;;  %v585_v60 = vpack.c.bf16 %v219_v54, %v217_v53 }
  0x58   :  { %v216_v61 = vld [vmem:[#allocation7 + $0x60] sm:$0xff]  ;;  %v218_v62 = vld [vmem:[#allocation7 + $0x70] sm:$0xff]  ;;  %v565_v63 = vpack.c.bf16 %v114_v56, %v112_v55  ;;  %v221_v1 = vld [vmem:[#allocation7 + $0x88] sm:$0xff] }
  0x59   :  { %580 = vmatpush1.bf16.msra.mxu1 %v579_v45  ;;  %v113_v0 = vld [vmem:[#allocation5 + $0xd0] sm:$0xff]  ;;  %v223_v2 = vld [vmem:[#allocation7 + $0x98] sm:$0xff]  ;;  %v116_v3 = vld [vmem:[#allocation5 + $0xe8] sm:$0xff]  ;;  %v587_v5 = vpack.c.bf16 %v218_v62, %v216_v61 }
  0x5a   :  { %556 = vmatpush1.bf16.msra.mxu0 %v555_v31  ;;  %582 = vmatprep.subr.bf16.mxu1 %v581_v48  ;;  %v118_v4 = vld [vmem:[#allocation5 + $0xf8] sm:$0xff]  ;;  %v567_v6 = vpack.c.bf16 %v113_v0, %v111_v59  ;;  %v115_v7 = vld [vmem:[#allocation5 + $0xe0] sm:$0xff]  ;;  %v589_v8 = vpack.c.bf16 %v223_v2, %v221_v1  ;;  %v222_v10 = vld [vmem:[#allocation7 + $0x90] sm:$0xff] }
  0x5b   :  { %558 = vmatprep.subr.bf16.mxu0 %v557_v36  ;;  %v220_v9 = vld [vmem:[#allocation7 + $0x80] sm:$0xff]  ;;  %v569_v11 = vpack.c.bf16 %v118_v4, %v116_v3  ;;  %v117_v12 = vld [vmem:[#allocation5 + $0xf0] sm:$0xff]  ;;  %v225_v13 = vld [vmem:[#allocation7 + $0xa8] sm:$0xff] }
  0x5c   :  { %v227_v14 = vld [vmem:[#allocation7 + $0xb8] sm:$0xff]  ;;  %v591_v15 = vpack.c.bf16 %v222_v10, %v220_v9  ;;  %v571_v16 = vpack.c.bf16 %v117_v12, %v115_v7  ;;  %v224_v18 = vld [vmem:[#allocation7 + $0xa0] sm:$0xff]  ;;  %v226_v19 = vld [vmem:[#allocation7 + $0xb0] sm:$0xff] }
  0x5d   :  { %584 = vmatpush1.bf16.msra.mxu1 %v583_v57  ;;  %v593_v17 = vpack.c.bf16 %v227_v14, %v225_v13  ;;  %v229_v20 = vld [vmem:[#allocation7 + $0xc8] sm:$0xff]  ;;  %v231_v21 = vld [vmem:[#allocation7 + $0xd8] sm:$0xff]  ;;  %v595_v22 = vpack.c.bf16 %v226_v19, %v224_v18  ;;  %v228_v25 = vld [vmem:[#allocation7 + $0xc0] sm:$0xff] }
  0x5e   :  { %560 = vmatpush1.bf16.msra.mxu0 %v559_v46  ;;  %586 = vmatprep.subr.bf16.mxu1 %v585_v60  ;;  %v86_v23 = vld [vmem:[#allocation2] sm:$0xff]  ;;  %v597_v24 = vpack.c.bf16 %v231_v21, %v229_v20  ;;  %v230_v26 = vld [vmem:[#allocation7 + $0xd0] sm:$0xff]  ;;  %v233_v27 = vld [vmem:[#allocation7 + $0xe8] sm:$0xff] }
  0x5f   :  { %562 = vmatprep.subr.bf16.mxu0 %v561_v51  ;;  %v235_v28 = vld [vmem:[#allocation7 + $0xf8] sm:$0xff]  ;;  %v599_v29 = vpack.c.bf16 %v230_v26, %v228_v25  ;;  %v232_v31 = vld [vmem:[#allocation7 + $0xe0] sm:$0xff]  ;;  %v234_v32 = vld [vmem:[#allocation7 + $0xf0] sm:$0xff] }
  0x60   :  { %v601_v30 = vpack.c.bf16 %v235_v28, %v233_v27  ;;  %v237_v33 = vld [vmem:[#allocation7 + $0x108] sm:$0xff]  ;;  %v239_v34 = vld [vmem:[#allocation7 + $0x118] sm:$0xff]  ;;  %v603_v35 = vpack.c.bf16 %v234_v32, %v232_v31  ;;  %v236_v37 = vld [vmem:[#allocation7 + $0x100] sm:$0xff] }
  0x61   :  { %588 = vmatpush1.bf16.msra.mxu1 %v587_v5  ;;  %v605_v36 = vpack.c.bf16 %v239_v34, %v237_v33  ;;  %v238_v38 = vld [vmem:[#allocation7 + $0x110] sm:$0xff]  ;;  %v241_v39 = vld [vmem:[#allocation7 + $0x128] sm:$0xff]  ;;  %v243_v40 = vld [vmem:[#allocation7 + $0x138] sm:$0xff] }
  0x62   :  { %564 = vmatpush1.bf16.msra.mxu0 %v563_v58  ;;  %590 = vmatprep.subr.bf16.mxu1 %v589_v8  ;;  %v607_v41 = vpack.c.bf16 %v238_v38, %v236_v37  ;;  %v609_v42 = vpack.c.bf16 %v243_v40, %v241_v39  ;;  %v240_v43 = vld [vmem:[#allocation7 + $0x120] sm:$0xff]  ;;  %v242_v44 = vld [vmem:[#allocation7 + $0x130] sm:$0xff]  ;;  %v245_v45 = vld [vmem:[#allocation7 + $0x148] sm:$0xff] }
  0x63   :  { %566 = vmatprep.subr.bf16.mxu0 %v565_v63  ;;  %v247_v46 = vld [vmem:[#allocation7 + $0x158] sm:$0xff]  ;;  %v611_v47 = vpack.c.bf16 %v242_v44, %v240_v43  ;;  %v244_v49 = vld [vmem:[#allocation7 + $0x140] sm:$0xff]  ;;  %v246_v50 = vld [vmem:[#allocation7 + $0x150] sm:$0xff] }
  0x64   :  { %v613_v48 = vpack.c.bf16 %v247_v46, %v245_v45  ;;  %v249_v51 = vld [vmem:[#allocation7 + $0x168] sm:$0xff]  ;;  %v251_v52 = vld [vmem:[#allocation7 + $0x178] sm:$0xff]  ;;  %v615_v53 = vpack.c.bf16 %v246_v50, %v244_v49  ;;  %v248_v55 = vld [vmem:[#allocation7 + $0x160] sm:$0xff] }
  0x65   :  { %592 = vmatpush1.bf16.msra.mxu1 %v591_v15  ;;  %v617_v54 = vpack.c.bf16 %v251_v52, %v249_v51  ;;  %v250_v56 = vld [vmem:[#allocation7 + $0x170] sm:$0xff]  ;;  %v253_v58 = vld [vmem:[#allocation7 + $0x188] sm:$0xff]  ;;  %v255_v59 = vld [vmem:[#allocation7 + $0x198] sm:$0xff] }
  0x66   :  { %568 = vmatpush1.bf16.msra.mxu0 %v567_v6  ;;  %594 = vmatprep.subr.bf16.mxu1 %v593_v17  ;;  %v619_v57 = vpack.c.bf16 %v250_v56, %v248_v55  ;;  %v621_v60 = vpack.c.bf16 %v255_v59, %v253_v58  ;;  %v252_v61 = vld [vmem:[#allocation7 + $0x180] sm:$0xff]  ;;  %v254_v62 = vld [vmem:[#allocation7 + $0x190] sm:$0xff]  ;;  %v257_v0 = vld [vmem:[#allocation7 + $0x1a8] sm:$0xff] }
  0x67   :  { %570 = vmatprep.subr.bf16.mxu0 %v569_v11  ;;  %v623_v63 = vpack.c.bf16 %v254_v62, %v252_v61  ;;  %v259_v1 = vld [vmem:[#allocation7 + $0x1b8] sm:$0xff]  ;;  %v256_v3 = vld [vmem:[#allocation7 + $0x1a0] sm:$0xff]  ;;  %v258_v4 = vld [vmem:[#allocation7 + $0x1b0] sm:$0xff] }
  0x68   :  { %v625_v2 = vpack.c.bf16 %v259_v1, %v257_v0  ;;  %v627_v5 = vpack.c.bf16 %v258_v4, %v256_v3  ;;  %v261_v6 = vld [vmem:[#allocation7 + $0x1c8] sm:$0xff]  ;;  %v263_v7 = vld [vmem:[#allocation7 + $0x1d8] sm:$0xff]  ;;  %v260_v8 = vld [vmem:[#allocation7 + $0x1c0] sm:$0xff] }
  0x69   :  { %596 = vmatpush1.bf16.msra.mxu1 %v595_v22  ;;  %v629_v9 = vpack.c.bf16 %v263_v7, %v261_v6  ;;  %v262_v10 = vld [vmem:[#allocation7 + $0x1d0] sm:$0xff]  ;;  %v265_v11 = vld [vmem:[#allocation7 + $0x1e8] sm:$0xff]  ;;  %v267_v12 = vld [vmem:[#allocation7 + $0x1f8] sm:$0xff] }
  0x6a   :  { %572 = vmatpush1.bf16.msra.mxu0 %v571_v16  ;;  %598 = vmatprep.subr.bf16.mxu1 %v597_v24  ;;  %v631_v13 = vpack.c.bf16 %v262_v10, %v260_v8  ;;  %v633_v14 = vpack.c.bf16 %v267_v12, %v265_v11  ;;  %v264_v15 = vld [vmem:[#allocation7 + $0x1e0] sm:$0xff]  ;;  %v266_v16 = vld [vmem:[#allocation7 + $0x1f0] sm:$0xff]  ;;  %v370_v19 = vld [vmem:[#allocation8 + $0x88] sm:$0xff] }
  0x6b   :  { %v635_v17 = vpack.c.bf16 %v266_v16, %v264_v15  ;;  %v369_v18 = vld [vmem:[#allocation8 + $0x80] sm:$0xff]  ;;  %v354_v22 = vld [vmem:[#allocation8 + $0x8] sm:$0xff]  ;;  %v372_v24 = vld [vmem:[#allocation8 + $0x98] sm:$0xff] }
  0x6c   :  { %v353_v20 = vld [vmem:[#allocation8] sm:$0xff]  ;;  %v637_v21 = vpack.c.bf16 %v370_v19, %v369_v18  ;;  %v355_v27 = vld [vmem:[#allocation8 + $0x10] sm:$0xff]  ;;  %v356_v28 = vld [vmem:[#allocation8 + $0x18] sm:$0xff] }
  0x6d   :  { %196 = vmatmul.mubr.f32.vlgmr.msra.gmra.mrb[0].mxu0 %v86_v23  ;;  %600 = vmatpush1.bf16.msra.mxu1 %v599_v29  ;;  %v371_v23 = vld [vmem:[#allocation8 + $0x90] sm:$0xff]  ;;  %v639_v25 = vpack.c.bf16 %v354_v22, %v353_v20  ;;  %v373_v29 = vld [vmem:[#allocation8 + $0xa0] sm:$0xff]  ;;  %v643_v31 = vpack.c.bf16 %v356_v28, %v355_v27  ;;  %v358_v34 = vld [vmem:[#allocation8 + $0x28] sm:$0xff] }
  0x6e   :  { %602 = vmatprep.subr.bf16.mxu1 %v601_v30  ;;  %v641_v26 = vpack.c.bf16 %v372_v24, %v371_v23  ;;  %638 = vmatprep.subr.bf16.mxu0 %v637_v21  ;;  %v374_v30 = vld [vmem:[#allocation8 + $0xa8] sm:$0xff]  ;;  %v357_v33 = vld [vmem:[#allocation8 + $0x20] sm:$0xff]  ;;  %v359_v39 = vld [vmem:[#allocation8 + $0x30] sm:$0xff] }
  0x6f   :  { %640 = vmatpush3.bf16.msra.mxu0 %v639_v25  ;;  %v645_v32 = vpack.c.bf16 %v374_v30, %v373_v29  ;;  %v647_v37 = vpack.c.bf16 %v358_v34, %v357_v33  ;;  %v360_v40 = vld [vmem:[#allocation8 + $0x38] sm:$0xff]  ;;  %v377_v55 = vld [vmem:[#allocation8 + $0xc0] sm:$0xff]  ;;  %v378_v56 = vld [vmem:[#allocation8 + $0xc8] sm:$0xff] }
  0x70   :  { %642 = vmatprep.subr.bf16.mxu0 %v641_v26  ;;  %v119_v45 = vld [vmem:[%s952_s2] sm:$0x3]  ;;  %v361_v58 = vld [vmem:[#allocation8 + $0x40] sm:$0xff]  ;;  %v362_v59 = vld [vmem:[#allocation8 + $0x48] sm:$0xff] }
  0x71   :  { %604 = vmatpush1.bf16.msra.mxu1 %v603_v35  ;;  %v375_v35 = vld [vmem:[#allocation8 + $0xb0] sm:$0xff]  ;;  %v380_v62 = vld [vmem:[#allocation8 + $0xd8] sm:$0xff]  ;;  %v381_v3 = vld [vmem:[#allocation8 + $0xe0] sm:$0xff] }
  0x72   :  { %606 = vmatprep.subr.bf16.mxu1 %v605_v36  ;;  %v376_v36 = vld [vmem:[#allocation8 + $0xb8] sm:$0xff]  ;;  %v379_v61 = vld [vmem:[#allocation8 + $0xd0] sm:$0xff]  ;;  %v382_v4 = vld [vmem:[#allocation8 + $0xe8] sm:$0xff] }
  0x73   :  { %644 = vmatpush3.bf16.msra.mxu0 %v643_v31  ;;  %v649_v38 = vpack.c.bf16 %v376_v36, %v375_v35  ;;  %v363_v0 = vld [vmem:[#allocation8 + $0x50] sm:$0xff]  ;;  %v364_v1 = vld [vmem:[#allocation8 + $0x58] sm:$0xff]  ;;  %v661_v6 = vpack.c.bf16 %v382_v4, %v381_v3  ;;  %v366_v7 = vld [vmem:[#allocation8 + $0x68] sm:$0xff] }
  0x74   :  { %646 = vmatprep.subr.bf16.mxu0 %v645_v32  ;;  %v383_v8 = vld [vmem:[#allocation8 + $0xf0] sm:$0xff]  ;;  %v268_v15 = vld [vmem:[%s954_s4] sm:$0x3] }
  0x75   :  { %608 = vmatpush1.bf16.msra.mxu1 %v607_v41  ;;  %v651_v41 = vpack.c.bf16 %v360_v40, %v359_v39  ;;  %v367_v12 = vld [vmem:[#allocation8 + $0x70] sm:$0xff]  ;;  %v502_v25 = vld [vmem:[%s956_s6] ss:$0 sm:$0xff]  ;;  %s779_s6 = scalar_lea.vmem %s492_s0, 128 }
  0x76   :  { %610 = vmatprep.subr.bf16.mxu1 %v609_v42  ;;  %v121_v42 = vlaneseq  ;;  %v504_v32 = vld [vmem:[%s957_s7] ss:$0 sm:$0xff]  ;;  %p780_p4 = scmp.ne.s32.totalorder %s492_s0, %s779_s6  ;;  %p785_p6 = scmp.lt.s32.totalorder %s779_s6, %s779_s6 }
  0x77   :  { %648 = vmatpush3.bf16.msra.mxu0 %v647_v37  ;;  %v505_v34 = vld [vmem:[%s958_s8] ss:$0 sm:$0xff] }
  0x78   :  { %650 = vmatprep.subr.bf16.mxu0 %v649_v38  ;;  %v122_v43 = vshrl.u32 %v121_v42, 7  ;;  %p786_p7 = por %p785_p6, %p784_p5 }
  0x79   :  { %612 = vmatpush1.bf16.msra.mxu1 %v611_v47 }
  0x7a   :  { %614 = vmatprep.subr.bf16.mxu1 %v613_v48  ;;  %v123_v44 = vsub.s32 0, %v122_v43  ;;  %v127_v46 = vsub.s32 1, %v122_v43  ;;  %p787_p8 = pnand %p786_p7, %p780_p4 }
  0x7b   :  { %652 = vmatpush3.bf16.msra.mxu0 %v651_v41 }
  0x7c   :  { %v124_v47 = vrot.slane %v119_v45, %v123_v44  ;;  %v128_v48 = vrot.slane %v119_v45, %v127_v46  ;;  %v273_v16 = vrot.slane %v268_v15, %v123_v44 }
  0x7d   :  { %616 = vmatpush1.bf16.msra.mxu1 %v615_v53 }
  0x7e   :  { %618 = vmatprep.subr.bf16.mxu1 %v617_v54 }
  0x81   :  { %620 = vmatpush1.bf16.msra.mxu1 %v619_v57  ;;  %v653_v57 = vpack.c.bf16 %v378_v56, %v377_v55 }
  0x82   :  { %622 = vmatprep.subr.bf16.mxu1 %v621_v60  ;;  %v655_v60 = vpack.c.bf16 %v362_v59, %v361_v58 }
  0x83   :  { %654 = vmatprep.subr.bf16.mxu0 %v653_v57 }
  0x84   :  { %656 = vmatpush3.bf16.msra.mxu0 %v655_v60 }
  0x85   :  { %624 = vmatpush1.bf16.msra.mxu1 %v623_v63  ;;  %v657_v63 = vpack.c.bf16 %v380_v62, %v379_v61 }
  0x86   :  { %626 = vmatprep.subr.bf16.mxu1 %v625_v2  ;;  %v659_v2 = vpack.c.bf16 %v364_v1, %v363_v0 }
  0x87   :  { %658 = vmatprep.subr.bf16.mxu0 %v657_v63 }
  0x88   :  { %660 = vmatpush3.bf16.msra.mxu0 %v659_v2 }
  0x89   :  { %628 = vmatpush1.bf16.msra.mxu1 %v627_v5  ;;  %v365_v5 = vld [vmem:[#allocation8 + $0x60] sm:$0xff]  ;;  %662 = vmatprep.subr.bf16.mxu0 %v661_v6 }
  0x8a   :  { %630 = vmatprep.subr.bf16.mxu1 %v629_v9  ;;  %v384_v9 = vld [vmem:[#allocation8 + $0xf8] sm:$0xff]  ;;  %v663_v10 = vpack.c.bf16 %v366_v7, %v365_v5 }
  0x8b   :  { %v665_v11 = vpack.c.bf16 %v384_v9, %v383_v8 }
  0x8c   :  { %664 = vmatpush3.bf16.msra.mxu0 %v663_v10 }
  0x8d   :  { %632 = vmatpush1.bf16.msra.mxu1 %v631_v13  ;;  %v368_v13 = vld [vmem:[#allocation8 + $0x78] sm:$0xff]  ;;  %666 = vmatprep.subr.bf16.mxu0 %v665_v11 }
  0x8e   :  { %634 = vmatprep.subr.bf16.mxu1 %v633_v14  ;;  %v667_v14 = vpack.c.bf16 %v368_v13, %v367_v12 }
  0x90   :  { %668 = vmatpush3.bf16.msra.mxu0 %v667_v14 }
  0x91   :  { %636 = vmatpush1.bf16.msra.mxu1 %v635_v17  ;;  %v277_v17 = vrot.slane %v268_v15, %v127_v46 }
 0x140   :  { %v197_v49 = vpop.f32.mrb[0].mxu0 }
 0x141   :  { %v198_v50 = vadd.f32 %v197_v49, %v124_v47  ;;  %v199_v51 = vpop.f32.mrb[1].mxu0 }
 0x142   :  { %v200_v52 = vadd.f32 %v199_v51, %v128_v48 }
 0x144   :  { %679 = vtanh.f32 %v200_v52 }
 0x145   :  { %681 = vtanh.f32 %v198_v50 }
 0x14e   :  { %v680_v53 = vpop.eup %679 }
 0x14f   :  { %v682_v54 = vpop.eup %681  ;;  %344 = vmatprep.mubr.f32.mxu1 %v680_v53 }
 0x150   :  { %345 = vmatmul.mubr.f32.vlgmr.msra.gmra.mrb[0].mxu1 %v682_v54 }
 0x223   :  { %v346_v18 = vpop.f32.mrb[0].mxu1 }
 0x224   :  { %v347_v19 = vadd.f32 %v346_v18, %v273_v16  ;;  %v348_v20 = vpop.f32.mrb[1].mxu1 }
 0x225   :  { %v349_v21 = vadd.f32 %v348_v20, %v277_v17 }
 0x227   :  { %683 = vtanh.f32 %v349_v21 }
 0x228   :  { %685 = vtanh.f32 %v347_v19 }
 0x231   :  { %v684_v22 = vpop.eup %683 }
 0x232   :  { %v686_v23 = vpop.eup %685  ;;  %456 = vmatprep.mubr.f32.mxu0 %v684_v22 }
 0x233   :  { %457 = vmatmul.mubr.f32.vlgmr.msra.gmra.mrb[2].mxu0 %v686_v23 }
 0x306   :  { %v538_v24 = vpop.f32.mrb[2].mxu0 }
 0x307   :  { %v539_v26 = vpop.f32.mrb[3].mxu0 }
 0x308   :  { %v540_v27 = vadd.f32 %v539_v26, %v538_v24 }
 0x30a   :  { %v459_v28 = vadd.f32 %v540_v27, %v502_v25 }
 0x30c   :  { %v503_v29 = vmul.f32 -1.442695, %v459_v28 }
 0x30e   :  { %687 = vpow2.f32 %v503_v29 }
 0x318   :  { %v688_v30 = vpop.eup %687 }
 0x319   :  { %v465_v31 = vadd.f32 1.0, %v688_v30 }
 0x31b   :  { %689 = vrcp.f32 %v465_v31 }
 0x325   :  { %v690_v33 = vpop.eup %689 }
 0x326   :  { %v475_v35 = vmul.f32 %v690_v33, %v504_v32 }
 0x328   :  { %v483_v36 = vadd.f32 %v505_v34, %v475_v35 }
 0x32a   :  { %484 = vst [vmem:[#allocation10] sm:$0xff] %v483_v36 }
 0x32b   :  { %790 = shalt.err (!%p787_p8)
}
 0x32c   :  { %s791_s27 = scalar_lea.hbm %s959_s9, 128 }
 0x32d   :  { %p792_p9 = scmp.ne.s32.totalorder %s959_s9, %s791_s27  ;;  %p795_p10 = scmp.lt.u32.totalorder %s791_s27, %s959_s9 }
 0x32f   :  { %p797_p11 = pnand %p795_p10, %p792_p9 }
 0x331   :  { %800 = shalt.err (!%p797_p11)
}
 0x332   :  { %494 = dma.vmem_to_hbm [thread:$0]  %s492_s0, 128, %s959_s9, [#allocation4]  }
 0x333   :  { %807 = dma.done.wait [#allocation4], 128  }
 0x334   :  { %808 = vsyncadd [#allocation4], 4294967168 }
 0x335   :  { %498 = vsyncpa [#allocation3], 1 }
 0x336   :  { %499 = vsyncpa [#allocation6], 1 }
 0x337   :  { %500 = vsyncpa [#allocation9], 1 }
 0x338   :  { %501 = vsyncpa [#allocation4], 1 }

</bundles_post_ra>
